<compile_context>
chip_gen: v7x
topology: tpu7x:2x2x1
jax: 0.10.0
libtpu: 0.0.40
codegen_flags: <defaults>
</compile_context>

<pallas_src>
import functools
import math

import jax
import jax.numpy as jnp
import numpy as np
from jax.experimental import pallas as pl
from jax.experimental.pallas import tpu as pltpu


# ----------------------------------------------------------------------------
# In-kernel math helpers
# ----------------------------------------------------------------------------
def _gelu_tanh(x):
    # tanh-approximate GELU (EUP tanh instead of a ~10-op VALU erf rational).
    # Max abs deviation from exact-erf GELU ~3e-3 (well within test tolerance).
    c = math.sqrt(2.0 / math.pi)
    return 0.5 * x * (1.0 + jnp.tanh(c * (x + 0.044715 * (x * x * x))))


# ----------------------------------------------------------------------------
# Kernel: one block of `bb` batches per grid step.
#   QKV proj -> per-batch MHA -> out proj -> +q -> LayerNorm -> MLP(GELU) -> +resid
# ----------------------------------------------------------------------------
def _perceiver_block_kernel(
    q_ref, x_ref,              # (bb*Lq, E) f32, (bb*Lk, E) bf16
    wq_ref, bq_ref,            # (E, E) bf16 (scale folded), (1, E) f32
    wkv_ref, bkv_ref,          # (E, 2E) bf16, (1, 2E) f32
    wo_ref, bo_ref,            # (E, E) bf16, (1, E) f32
    ln_g_ref, ln_b_ref,        # (1, E), (1, E) f32
    w1_ref, b1_ref,            # (E, M) bf16, (1, M) f32
    w2_ref, b2_ref,            # (M, E) bf16, (1, E) f32
    o_ref,                     # (bb*Lq, E) f32
    *, n_heads: int, bb: int,
):
    Rq, E = q_ref.shape
    Rk = x_ref.shape[0]
    Lq = Rq // bb
    Lk = Rk // bb
    Dh = E // n_heads

    def mm(a_bf16, w_ref):     # (N, K)bf16 @ (K, O)bf16 -> f32 (MXU)
        return jax.lax.dot_general(
            a_bf16, w_ref[...], (((1,), (0,)), ((), ())),
            preferred_element_type=jnp.float32)

    qf = q_ref[...]                                   # keep f32 for residual
    q_bf = qf.astype(jnp.bfloat16)
    x_bf = x_ref[...]                                 # already bf16 (wrapper cast)

    # Row-batched projections across the whole block of batches
    # (q-scale folded into wq/bq; k & v fused into one matmul).
    qp = mm(q_bf, wq_ref) + bq_ref[...]               # (Rq, E)
    kv = mm(x_bf, wkv_ref) + bkv_ref[...]             # (Rk, 2E)

    qp_bf = qp.astype(jnp.bfloat16)
    kp_bf = kv[:, 0:E].astype(jnp.bfloat16)
    vp_bf = kv[:, E:2 * E].astype(jnp.bfloat16)

    # Attention: the only per-batch part.  Head outputs stay in vregs and are
    # concatenated (no VMEM scratch round trip / masked column stores).
    per_batch = []
    for b in range(bb):                               # static unroll, bb small
        q_b = qp_bf[b * Lq:(b + 1) * Lq, :]
        k_b = kp_bf[b * Lk:(b + 1) * Lk, :]
        v_b = vp_bf[b * Lk:(b + 1) * Lk, :]
        heads = []
        for h in range(n_heads):                      # static unroll, small n_heads
            lo = h * Dh
            qh = q_b[:, lo:lo + Dh]
            kh = k_b[:, lo:lo + Dh]
            vh = v_b[:, lo:lo + Dh]
            s = jax.lax.dot_general(qh, kh, (((1,), (1,)), ((), ())),
                                    preferred_element_type=jnp.float32)  # (Lq, Lk)
            s = s - jnp.max(s, axis=-1, keepdims=True)
            e = jnp.exp(s)
            p = e * pl.reciprocal(jnp.sum(e, axis=-1, keepdims=True), approx=True)
            oh = jax.lax.dot_general(p.astype(jnp.bfloat16), vh,
                                     (((1,), (0,)), ((), ())),
                                     preferred_element_type=jnp.float32)  # (Lq, Dh)
            heads.append(oh)
        per_batch.append(jnp.concatenate(heads, axis=-1))   # (Lq, E)
    attn_cat = jnp.concatenate(per_batch, axis=0)            # (Rq, E) f32

    # One full-width (K = E) output projection for the whole row block.
    attn = mm(attn_cat.astype(jnp.bfloat16), wo_ref) + bo_ref[...]

    # Residual with the (un-normalized) query, exactly as the PyTorch forward.
    resid = attn + qf

    # LayerNorm (eps=1e-5, biased variance) in f32.
    mu = jnp.mean(resid, axis=-1, keepdims=True)
    var = jnp.mean((resid - mu) ** 2, axis=-1, keepdims=True)
    ln = (resid - mu) * jax.lax.rsqrt(var + 1e-5)
    ln = ln * ln_g_ref[...] + ln_b_ref[...]

    # MLP: Linear -> GELU(tanh approx) -> Linear ; dropout(p=0) == identity.
    h1 = mm(ln.astype(jnp.bfloat16), w1_ref) + b1_ref[...]
    h1 = _gelu_tanh(h1)
    h2 = mm(h1.astype(jnp.bfloat16), w2_ref) + b2_ref[...]

    o_ref[...] = (h2 + resid).astype(o_ref.dtype)


# ----------------------------------------------------------------------------
# Wrapper
# ----------------------------------------------------------------------------
@functools.partial(jax.jit, static_argnames="n_heads")
def perceiver_attention(x, q, params, *, n_heads):
    """x: (Lk, B, E) keys/values, q: (Lq, B, E) queries — PyTorch (L, B, E)."""
    Lq, B, E = q.shape
    Lk = x.shape[0]
    M = params["w1"].shape[0]
    Dh = E // n_heads
    scale = 1.0 / math.sqrt(Dh)

    # Batch-major 2-D token slabs (reshape/transpose once, outside the kernel).
    # x is shipped bf16 (MXU operand only); q stays f32 (needed for residual).
    q2 = jnp.transpose(q, (1, 0, 2)).reshape(B * Lq, E).astype(jnp.float32)
    x2 = jnp.transpose(x, (1, 0, 2)).reshape(B * Lk, E).astype(jnp.bfloat16)

    # Batches per grid block: target ~256 query rows per block so the
    # projection / LN / MLP matmuls run on big row slabs (whole problem when
    # B*L is small); with many batches this still leaves >=2 parallel grid
    # blocks for the two v7x TensorCores.
    target_rows = 256
    bb = max(1, min(B, target_rows // max(Lq, 1)))
    while B % bb:
        bb -= 1
    nblk = B // bb

    # Host/XLA-side parameter prep: (K, O) layout, scale folded, bf16 weights.
    in_w, in_b = params["in_w"], params["in_b"]
    wq = (in_w[0:E, :].T * scale).astype(jnp.bfloat16)            # (E, E)
    bq = (in_b[0:E] * scale).astype(jnp.float32)[None, :]         # (1, E)
    wkv = in_w[E:3 * E, :].T.astype(jnp.bfloat16)                 # (E, 2E)
    bkv = in_b[E:3 * E].astype(jnp.float32)[None, :]              # (1, 2E)
    wo = params["out_w"].T.astype(jnp.bfloat16)                   # (E, E)
    bo = params["out_b"].astype(jnp.float32)[None, :]             # (1, E)
    ln_g = params["ln2_g"].astype(jnp.float32)[None, :]
    ln_b = params["ln2_b"].astype(jnp.float32)[None, :]
    w1 = params["w1"].T.astype(jnp.bfloat16)                      # (E, M)
    b1 = params["b1"].astype(jnp.float32)[None, :]                # (1, M)
    w2 = params["w2"].T.astype(jnp.bfloat16)                      # (M, E)
    b2 = params["b2"].astype(jnp.float32)[None, :]                # (1, E)

    # NOTE: at production sizes (large E, M) mark these constant weight specs
    # pipeline_mode=pl.Buffered(1) (they never change) and tile M with an
    # extra "arbitrary" grid axis so the kernel fits v7x's 64 MiB VMEM.
    const = lambda shape: pl.BlockSpec(shape, lambda i: (0, 0))

    grid_spec = pltpu.PrefetchScalarGridSpec(
        num_scalar_prefetch=0,
        grid=(nblk,),
        in_specs=[
            pl.BlockSpec((bb * Lq, E), lambda i: (i, 0)),   # q rows of block i
            pl.BlockSpec((bb * Lk, E), lambda i: (i, 0)),   # x rows of block i
            const((E, E)), const((1, E)),                   # wq, bq
            const((E, 2 * E)), const((1, 2 * E)),           # wkv, bkv
            const((E, E)), const((1, E)),                   # wo, bo
            const((1, E)), const((1, E)),                   # ln gamma, beta
            const((E, M)), const((1, M)),                   # w1, b1
            const((M, E)), const((1, E)),                   # w2, b2
        ],
        out_specs=pl.BlockSpec((bb * Lq, E), lambda i: (i, 0)),
    )

    out2 = pl.pallas_call(
        functools.partial(_perceiver_block_kernel, n_heads=n_heads, bb=bb),
        out_shape=jax.ShapeDtypeStruct((B * Lq, E), jnp.float32),
        grid_spec=grid_spec,
        compiler_params=pltpu.CompilerParams(
            dimension_semantics=("parallel",),
            vmem_limit_bytes=32 * 1024 * 1024),
    )(q2, x2, wq, bq, wkv, bkv, wo, bo, ln_g, ln_b, w1, b1, w2, b2)

    # back to PyTorch (Lq, B, E)
    return jnp.transpose(out2.reshape(B, Lq, E), (1, 0, 2))


# ----------------------------------------------------------------------------
# Pure-JAX reference (mirrors the PyTorch forward) for a correctness check
# ----------------------------------------------------------------------------
def perceiver_attention_ref(x, q, params, n_heads):
    E = q.shape[-1]
    Dh = E // n_heads
    qb = jnp.transpose(q, (1, 0, 2))
    xb = jnp.transpose(x, (1, 0, 2))
    B, Lq, _ = qb.shape
    Lk = xb.shape[1]

    def lin(a, w, b):
        return a @ w.T + b

    qp = lin(qb, params["in_w"][0:E], params["in_b"][0:E])
    kp = lin(xb, params["in_w"][E:2 * E], params["in_b"][E:2 * E])
    vp = lin(xb, params["in_w"][2 * E:], params["in_b"][2 * E:])

    qh = qp.reshape(B, Lq, n_heads, Dh).transpose(0, 2, 1, 3) / math.sqrt(Dh)
    kh = kp.reshape(B, Lk, n_heads, Dh).transpose(0, 2, 1, 3)
    vh = vp.reshape(B, Lk, n_heads, Dh).transpose(0, 2, 1, 3)
    s = jnp.einsum("bhqd,bhkd->bhqk", qh, kh)
    p = jax.nn.softmax(s, axis=-1)
    o = jnp.einsum("bhqk,bhkd->bhqd", p, vh).transpose(0, 2, 1, 3).reshape(B, Lq, E)
    o = lin(o, params["out_w"], params["out_b"])

    resid = o + qb
    mu = resid.mean(-1, keepdims=True)
    var = ((resid - mu) ** 2).mean(-1, keepdims=True)
    ln = (resid - mu) / jnp.sqrt(var + 1e-5) * params["ln2_g"] + params["ln2_b"]
    h1 = jax.nn.gelu(lin(ln, params["w1"], params["b1"]), approximate=False)
    h2 = lin(h1, params["w2"], params["b2"])
    out = h2 + resid
    return jnp.transpose(out, (1, 0, 2))


def init_params(key, embed_dim, mlp_dim):
    ks = jax.random.split(key, 8)
    s = 0.05
    return dict(
        in_w=jax.random.normal(ks[0], (3 * embed_dim, embed_dim), jnp.float32) * s,
        in_b=jax.random.normal(ks[1], (3 * embed_dim,), jnp.float32) * s,
        out_w=jax.random.normal(ks[2], (embed_dim, embed_dim), jnp.float32) * s,
        out_b=jax.random.normal(ks[3], (embed_dim,), jnp.float32) * s,
        ln2_g=jnp.ones((embed_dim,), jnp.float32),
        ln2_b=jnp.zeros((embed_dim,), jnp.float32),
        w1=jax.random.normal(ks[4], (mlp_dim, embed_dim), jnp.float32) * s,
        b1=jax.random.normal(ks[5], (mlp_dim,), jnp.float32) * s,
        w2=jax.random.normal(ks[6], (embed_dim, mlp_dim), jnp.float32) * s,
        b2=jax.random.normal(ks[7], (embed_dim,), jnp.float32) * s,
    )


if __name__ == "__main__":
    EMBED_DIM, MLP_DIM, N_HEADS = 32, 64, 4
    B, L_KV, L_Q = 2, 16, 8

    key = jax.random.PRNGKey(0)
    kx, kq, kp = jax.random.split(key, 3)
    x = jax.random.normal(kx, (L_KV, B, EMBED_DIM), jnp.float32)   # keys/values
    q = jax.random.normal(kq, (L_Q, B, EMBED_DIM), jnp.float32)    # latent queries
    params = init_params(kp, EMBED_DIM, MLP_DIM)

    out = perceiver_attention(x, q, params, n_heads=N_HEADS)
    out = jax.block_until_ready(out)

    ref = perceiver_attention_ref(x, q, params, N_HEADS)
    assert out.shape == (L_Q, B, EMBED_DIM)
    # Tolerance accounts for bf16 MXU operands, approx EUP reciprocal in the
    # softmax, and tanh-approximate GELU (ref uses exact erf GELU).
    np.testing.assert_allclose(np.asarray(out), np.asarray(ref),
                               atol=1e-2, rtol=1e-2)
    print("KERNEL_OK")
</pallas_src>

<mosaic_0001>
module attributes {stable_mosaic.version = 11 : i64} {
  func.func @_perceiver_block_kernel(%arg0: i32, %arg1: memref<16x32xf32, #tpu.memory_space<vmem>>, %arg2: memref<32x32xbf16, #tpu.memory_space<vmem>>, %arg3: memref<32x32xbf16, #tpu.memory_space<vmem>>, %arg4: memref<1x32xf32, #tpu.memory_space<vmem>>, %arg5: memref<32x64xbf16, #tpu.memory_space<vmem>>, %arg6: memref<1x64xf32, #tpu.memory_space<vmem>>, %arg7: memref<32x32xbf16, #tpu.memory_space<vmem>>, %arg8: memref<1x32xf32, #tpu.memory_space<vmem>>, %arg9: memref<1x32xf32, #tpu.memory_space<vmem>>, %arg10: memref<1x32xf32, #tpu.memory_space<vmem>>, %arg11: memref<32x64xbf16, #tpu.memory_space<vmem>>, %arg12: memref<1x64xf32, #tpu.memory_space<vmem>>, %arg13: memref<64x32xbf16, #tpu.memory_space<vmem>>, %arg14: memref<1x32xf32, #tpu.memory_space<vmem>>, %arg15: memref<16x32xf32, #tpu.memory_space<vmem>>) attributes {dimension_semantics = [#tpu.dimension_semantics<parallel>], iteration_bounds = array<i64: 1>, scalar_prefetch = 0 : i64, scratch_operands = 0 : i64, tpu.core_type = #tpu.core_type<tc>, window_params = [{transform_indices = @transform_0, window_bounds = array<i64: 16, 32>}, {transform_indices = @transform_1, window_bounds = array<i64: 32, 32>}, {pipeline_mode = #tpu.pipeline_mode<synchronous>, transform_indices = @transform_2, window_bounds = array<i64: 32, 32>}, {pipeline_mode = #tpu.pipeline_mode<synchronous>, transform_indices = @transform_3, window_bounds = array<i64: 1, 32>}, {pipeline_mode = #tpu.pipeline_mode<synchronous>, transform_indices = @transform_4, window_bounds = array<i64: 32, 64>}, {pipeline_mode = #tpu.pipeline_mode<synchronous>, transform_indices = @transform_5, window_bounds = array<i64: 1, 64>}, {pipeline_mode = #tpu.pipeline_mode<synchronous>, transform_indices = @transform_6, window_bounds = array<i64: 32, 32>}, {pipeline_mode = #tpu.pipeline_mode<synchronous>, transform_indices = @transform_7, window_bounds = array<i64: 1, 32>}, {pipeline_mode = #tpu.pipeline_mode<synchronous>, transform_indices = @transform_8, window_bounds = array<i64: 1, 32>}, {pipeline_mode = #tpu.pipeline_mode<synchronous>, transform_indices = @transform_9, window_bounds = array<i64: 1, 32>}, {pipeline_mode = #tpu.pipeline_mode<synchronous>, transform_indices = @transform_10, window_bounds = array<i64: 32, 64>}, {pipeline_mode = #tpu.pipeline_mode<synchronous>, transform_indices = @transform_11, window_bounds = array<i64: 1, 64>}, {pipeline_mode = #tpu.pipeline_mode<synchronous>, transform_indices = @transform_12, window_bounds = array<i64: 64, 32>}, {pipeline_mode = #tpu.pipeline_mode<synchronous>, transform_indices = @transform_13, window_bounds = array<i64: 1, 32>}, {transform_indices = @transform_14, window_bounds = array<i64: 16, 32>}]} {
    %c0 = arith.constant 0 : index
    %c0_0 = arith.constant 0 : index
    %0 = vector.load %arg1[%c0, %c0_0] : memref<16x32xf32, #tpu.memory_space<vmem>>, vector<16x32xf32>
    %1 = arith.truncf %0 : vector<16x32xf32> to vector<16x32xbf16>
    %c0_1 = arith.constant 0 : index
    %c0_2 = arith.constant 0 : index
    %2 = vector.load %arg2[%c0_1, %c0_2] : memref<32x32xbf16, #tpu.memory_space<vmem>>, vector<32x32xbf16>
    %c0_3 = arith.constant 0 : index
    %c0_4 = arith.constant 0 : index
    %3 = vector.load %arg3[%c0_3, %c0_4] : memref<32x32xbf16, #tpu.memory_space<vmem>>, vector<32x32xbf16>
    %cst = arith.constant dense<0.000000e+00> : vector<16x32xf32>
    %4 = tpu.matmul %1, %3, %cst {dimension_numbers = #tpu.dot_dimension_numbers<[1], [0], [0], [1], [0, 0, 1, 1], [], []>} : vector<16x32xbf16>, vector<32x32xbf16>, vector<16x32xf32> -> vector<16x32xf32>
    %c0_5 = arith.constant 0 : index
    %c0_6 = arith.constant 0 : index
    %5 = vector.load %arg4[%c0_5, %c0_6] : memref<1x32xf32, #tpu.memory_space<vmem>>, vector<1x32xf32>
    %6 = vector.broadcast %5 : vector<1x32xf32> to vector<16x32xf32>
    %7 = arith.addf %4, %6 : vector<16x32xf32>
    %c0_7 = arith.constant 0 : index
    %c0_8 = arith.constant 0 : index
    %8 = vector.load %arg5[%c0_7, %c0_8] : memref<32x64xbf16, #tpu.memory_space<vmem>>, vector<32x64xbf16>
    %cst_9 = arith.constant dense<0.000000e+00> : vector<32x64xf32>
    %9 = tpu.matmul %2, %8, %cst_9 {dimension_numbers = #tpu.dot_dimension_numbers<[1], [0], [0], [1], [0, 0, 1, 1], [], []>} : vector<32x32xbf16>, vector<32x64xbf16>, vector<32x64xf32> -> vector<32x64xf32>
    %c0_10 = arith.constant 0 : index
    %c0_11 = arith.constant 0 : index
    %10 = vector.load %arg6[%c0_10, %c0_11] : memref<1x64xf32, #tpu.memory_space<vmem>>, vector<1x64xf32>
    %11 = vector.broadcast %10 : vector<1x64xf32> to vector<32x64xf32>
    %12 = arith.addf %9, %11 : vector<32x64xf32>
    %13 = arith.truncf %7 : vector<16x32xf32> to vector<16x32xbf16>
    %14 = vector.extract_strided_slice %12 {offsets = [0, 0], sizes = [32, 32], strides = [1, 1]} : vector<32x64xf32> to vector<32x32xf32>
    %15 = arith.truncf %14 : vector<32x32xf32> to vector<32x32xbf16>
    %16 = vector.extract_strided_slice %12 {offsets = [0, 32], sizes = [32, 32], strides = [1, 1]} : vector<32x64xf32> to vector<32x32xf32>
    %17 = arith.truncf %16 : vector<32x32xf32> to vector<32x32xbf16>
    %18 = vector.extract_strided_slice %13 {offsets = [0, 0], sizes = [8, 32], strides = [1, 1]} : vector<16x32xbf16> to vector<8x32xbf16>
    %19 = vector.extract_strided_slice %15 {offsets = [0, 0], sizes = [16, 32], strides = [1, 1]} : vector<32x32xbf16> to vector<16x32xbf16>
    %20 = vector.extract_strided_slice %17 {offsets = [0, 0], sizes = [16, 32], strides = [1, 1]} : vector<32x32xbf16> to vector<16x32xbf16>
    %21 = vector.extract_strided_slice %18 {offsets = [0, 0], sizes = [8, 8], strides = [1, 1]} : vector<8x32xbf16> to vector<8x8xbf16>
    %22 = vector.extract_strided_slice %19 {offsets = [0, 0], sizes = [16, 8], strides = [1, 1]} : vector<16x32xbf16> to vector<16x8xbf16>
    %23 = vector.extract_strided_slice %20 {offsets = [0, 0], sizes = [16, 8], strides = [1, 1]} : vector<16x32xbf16> to vector<16x8xbf16>
    %cst_12 = arith.constant dense<0.000000e+00> : vector<8x16xf32>
    %24 = tpu.matmul %21, %22, %cst_12 {dimension_numbers = #tpu.dot_dimension_numbers<[1], [1], [0], [0], [0, 0, 1, 0], [], []>} : vector<8x8xbf16>, vector<16x8xbf16>, vector<8x16xf32> -> vector<8x16xf32>
    %cst_13 = arith.constant dense<0xFF800000> : vector<8xf32>
    %25 = vector.multi_reduction <maximumf>, %24, %cst_13 [1] : vector<8x16xf32> to vector<8xf32>
    %26 = vector.shape_cast %25 : vector<8xf32> to vector<8x1xf32>
    %27 = vector.broadcast %26 : vector<8x1xf32> to vector<8x16xf32>
    %28 = arith.subf %24, %27 : vector<8x16xf32>
    %29 = math.exp %28 : vector<8x16xf32>
    %cst_14 = arith.constant dense<0.000000e+00> : vector<8xf32>
    %30 = vector.multi_reduction <add>, %29, %cst_14 [1] : vector<8x16xf32> to vector<8xf32>
    %31 = vector.shape_cast %30 : vector<8xf32> to vector<8x1xf32>
    %32 = tpu.reciprocal %31 {approx = true} : vector<8x1xf32> -> vector<8x1xf32>
    %33 = vector.broadcast %32 : vector<8x1xf32> to vector<8x16xf32>
    %34 = arith.mulf %29, %33 : vector<8x16xf32>
    %35 = arith.truncf %34 : vector<8x16xf32> to vector<8x16xbf16>
    %cst_15 = arith.constant dense<0.000000e+00> : vector<8x8xf32>
    %36 = tpu.matmul %35, %23, %cst_15 {dimension_numbers = #tpu.dot_dimension_numbers<[1], [0], [0], [1], [0, 0, 1, 1], [], []>} : vector<8x16xbf16>, vector<16x8xbf16>, vector<8x8xf32> -> vector<8x8xf32>
    %37 = vector.extract_strided_slice %18 {offsets = [0, 8], sizes = [8, 8], strides = [1, 1]} : vector<8x32xbf16> to vector<8x8xbf16>
    %38 = vector.extract_strided_slice %19 {offsets = [0, 8], sizes = [16, 8], strides = [1, 1]} : vector<16x32xbf16> to vector<16x8xbf16>
    %39 = vector.extract_strided_slice %20 {offsets = [0, 8], sizes = [16, 8], strides = [1, 1]} : vector<16x32xbf16> to vector<16x8xbf16>
    %cst_16 = arith.constant dense<0.000000e+00> : vector<8x16xf32>
    %40 = tpu.matmul %37, %38, %cst_16 {dimension_numbers = #tpu.dot_dimension_numbers<[1], [1], [0], [0], [0, 0, 1, 0], [], []>} : vector<8x8xbf16>, vector<16x8xbf16>, vector<8x16xf32> -> vector<8x16xf32>
    %cst_17 = arith.constant dense<0xFF800000> : vector<8xf32>
    %41 = vector.multi_reduction <maximumf>, %40, %cst_17 [1] : vector<8x16xf32> to vector<8xf32>
    %42 = vector.shape_cast %41 : vector<8xf32> to vector<8x1xf32>
    %43 = vector.broadcast %42 : vector<8x1xf32> to vector<8x16xf32>
    %44 = arith.subf %40, %43 : vector<8x16xf32>
    %45 = math.exp %44 : vector<8x16xf32>
    %cst_18 = arith.constant dense<0.000000e+00> : vector<8xf32>
    %46 = vector.multi_reduction <add>, %45, %cst_18 [1] : vector<8x16xf32> to vector<8xf32>
    %47 = vector.shape_cast %46 : vector<8xf32> to vector<8x1xf32>
    %48 = tpu.reciprocal %47 {approx = true} : vector<8x1xf32> -> vector<8x1xf32>
    %49 = vector.broadcast %48 : vector<8x1xf32> to vector<8x16xf32>
    %50 = arith.mulf %45, %49 : vector<8x16xf32>
    %51 = arith.truncf %50 : vector<8x16xf32> to vector<8x16xbf16>
    %cst_19 = arith.constant dense<0.000000e+00> : vector<8x8xf32>
    %52 = tpu.matmul %51, %39, %cst_19 {dimension_numbers = #tpu.dot_dimension_numbers<[1], [0], [0], [1], [0, 0, 1, 1], [], []>} : vector<8x16xbf16>, vector<16x8xbf16>, vector<8x8xf32> -> vector<8x8xf32>
    %53 = vector.extract_strided_slice %18 {offsets = [0, 16], sizes = [8, 8], strides = [1, 1]} : vector<8x32xbf16> to vector<8x8xbf16>
    %54 = vector.extract_strided_slice %19 {offsets = [0, 16], sizes = [16, 8], strides = [1, 1]} : vector<16x32xbf16> to vector<16x8xbf16>
    %55 = vector.extract_strided_slice %20 {offsets = [0, 16], sizes = [16, 8], strides = [1, 1]} : vector<16x32xbf16> to vector<16x8xbf16>
    %cst_20 = arith.constant dense<0.000000e+00> : vector<8x16xf32>
    %56 = tpu.matmul %53, %54, %cst_20 {dimension_numbers = #tpu.dot_dimension_numbers<[1], [1], [0], [0], [0, 0, 1, 0], [], []>} : vector<8x8xbf16>, vector<16x8xbf16>, vector<8x16xf32> -> vector<8x16xf32>
    %cst_21 = arith.constant dense<0xFF800000> : vector<8xf32>
    %57 = vector.multi_reduction <maximumf>, %56, %cst_21 [1] : vector<8x16xf32> to vector<8xf32>
    %58 = vector.shape_cast %57 : vector<8xf32> to vector<8x1xf32>
    %59 = vector.broadcast %58 : vector<8x1xf32> to vector<8x16xf32>
    %60 = arith.subf %56, %59 : vector<8x16xf32>
    %61 = math.exp %60 : vector<8x16xf32>
    %cst_22 = arith.constant dense<0.000000e+00> : vector<8xf32>
    %62 = vector.multi_reduction <add>, %61, %cst_22 [1] : vector<8x16xf32> to vector<8xf32>
    %63 = vector.shape_cast %62 : vector<8xf32> to vector<8x1xf32>
    %64 = tpu.reciprocal %63 {approx = true} : vector<8x1xf32> -> vector<8x1xf32>
    %65 = vector.broadcast %64 : vector<8x1xf32> to vector<8x16xf32>
    %66 = arith.mulf %61, %65 : vector<8x16xf32>
    %67 = arith.truncf %66 : vector<8x16xf32> to vector<8x16xbf16>
    %cst_23 = arith.constant dense<0.000000e+00> : vector<8x8xf32>
    %68 = tpu.matmul %67, %55, %cst_23 {dimension_numbers = #tpu.dot_dimension_numbers<[1], [0], [0], [1], [0, 0, 1, 1], [], []>} : vector<8x16xbf16>, vector<16x8xbf16>, vector<8x8xf32> -> vector<8x8xf32>
    %69 = vector.extract_strided_slice %18 {offsets = [0, 24], sizes = [8, 8], strides = [1, 1]} : vector<8x32xbf16> to vector<8x8xbf16>
    %70 = vector.extract_strided_slice %19 {offsets = [0, 24], sizes = [16, 8], strides = [1, 1]} : vector<16x32xbf16> to vector<16x8xbf16>
    %71 = vector.extract_strided_slice %20 {offsets = [0, 24], sizes = [16, 8], strides = [1, 1]} : vector<16x32xbf16> to vector<16x8xbf16>
    %cst_24 = arith.constant dense<0.000000e+00> : vector<8x16xf32>
    %72 = tpu.matmul %69, %70, %cst_24 {dimension_numbers = #tpu.dot_dimension_numbers<[1], [1], [0], [0], [0, 0, 1, 0], [], []>} : vector<8x8xbf16>, vector<16x8xbf16>, vector<8x16xf32> -> vector<8x16xf32>
    %cst_25 = arith.constant dense<0xFF800000> : vector<8xf32>
    %73 = vector.multi_reduction <maximumf>, %72, %cst_25 [1] : vector<8x16xf32> to vector<8xf32>
    %74 = vector.shape_cast %73 : vector<8xf32> to vector<8x1xf32>
    %75 = vector.broadcast %74 : vector<8x1xf32> to vector<8x16xf32>
    %76 = arith.subf %72, %75 : vector<8x16xf32>
    %77 = math.exp %76 : vector<8x16xf32>
    %cst_26 = arith.constant dense<0.000000e+00> : vector<8xf32>
    %78 = vector.multi_reduction <add>, %77, %cst_26 [1] : vector<8x16xf32> to vector<8xf32>
    %79 = vector.shape_cast %78 : vector<8xf32> to vector<8x1xf32>
    %80 = tpu.reciprocal %79 {approx = true} : vector<8x1xf32> -> vector<8x1xf32>
    %81 = vector.broadcast %80 : vector<8x1xf32> to vector<8x16xf32>
    %82 = arith.mulf %77, %81 : vector<8x16xf32>
    %83 = arith.truncf %82 : vector<8x16xf32> to vector<8x16xbf16>
    %cst_27 = arith.constant dense<0.000000e+00> : vector<8x8xf32>
    %84 = tpu.matmul %83, %71, %cst_27 {dimension_numbers = #tpu.dot_dimension_numbers<[1], [0], [0], [1], [0, 0, 1, 1], [], []>} : vector<8x16xbf16>, vector<16x8xbf16>, vector<8x8xf32> -> vector<8x8xf32>
    %85 = tpu.concatenate %36, %52, %68, %84 in 1 : vector<8x8xf32>, vector<8x8xf32>, vector<8x8xf32>, vector<8x8xf32> -> vector<8x32xf32>
    %86 = vector.extract_strided_slice %13 {offsets = [8, 0], sizes = [8, 32], strides = [1, 1]} : vector<16x32xbf16> to vector<8x32xbf16>
    %87 = vector.extract_strided_slice %15 {offsets = [16, 0], sizes = [16, 32], strides = [1, 1]} : vector<32x32xbf16> to vector<16x32xbf16>
    %88 = vector.extract_strided_slice %17 {offsets = [16, 0], sizes = [16, 32], strides = [1, 1]} : vector<32x32xbf16> to vector<16x32xbf16>
    %89 = vector.extract_strided_slice %86 {offsets = [0, 0], sizes = [8, 8], strides = [1, 1]} : vector<8x32xbf16> to vector<8x8xbf16>
    %90 = vector.extract_strided_slice %87 {offsets = [0, 0], sizes = [16, 8], strides = [1, 1]} : vector<16x32xbf16> to vector<16x8xbf16>
    %91 = vector.extract_strided_slice %88 {offsets = [0, 0], sizes = [16, 8], strides = [1, 1]} : vector<16x32xbf16> to vector<16x8xbf16>
    %cst_28 = arith.constant dense<0.000000e+00> : vector<8x16xf32>
    %92 = tpu.matmul %89, %90, %cst_28 {dimension_numbers = #tpu.dot_dimension_numbers<[1], [1], [0], [0], [0, 0, 1, 0], [], []>} : vector<8x8xbf16>, vector<16x8xbf16>, vector<8x16xf32> -> vector<8x16xf32>
    %cst_29 = arith.constant dense<0xFF800000> : vector<8xf32>
    %93 = vector.multi_reduction <maximumf>, %92, %cst_29 [1] : vector<8x16xf32> to vector<8xf32>
    %94 = vector.shape_cast %93 : vector<8xf32> to vector<8x1xf32>
    %95 = vector.broadcast %94 : vector<8x1xf32> to vector<8x16xf32>
    %96 = arith.subf %92, %95 : vector<8x16xf32>
    %97 = math.exp %96 : vector<8x16xf32>
    %cst_30 = arith.constant dense<0.000000e+00> : vector<8xf32>
    %98 = vector.multi_reduction <add>, %97, %cst_30 [1] : vector<8x16xf32> to vector<8xf32>
    %99 = vector.shape_cast %98 : vector<8xf32> to vector<8x1xf32>
    %100 = tpu.reciprocal %99 {approx = true} : vector<8x1xf32> -> vector<8x1xf32>
    %101 = vector.broadcast %100 : vector<8x1xf32> to vector<8x16xf32>
    %102 = arith.mulf %97, %101 : vector<8x16xf32>
    %103 = arith.truncf %102 : vector<8x16xf32> to vector<8x16xbf16>
    %cst_31 = arith.constant dense<0.000000e+00> : vector<8x8xf32>
    %104 = tpu.matmul %103, %91, %cst_31 {dimension_numbers = #tpu.dot_dimension_numbers<[1], [0], [0], [1], [0, 0, 1, 1], [], []>} : vector<8x16xbf16>, vector<16x8xbf16>, vector<8x8xf32> -> vector<8x8xf32>
    %105 = vector.extract_strided_slice %86 {offsets = [0, 8], sizes = [8, 8], strides = [1, 1]} : vector<8x32xbf16> to vector<8x8xbf16>
    %106 = vector.extract_strided_slice %87 {offsets = [0, 8], sizes = [16, 8], strides = [1, 1]} : vector<16x32xbf16> to vector<16x8xbf16>
    %107 = vector.extract_strided_slice %88 {offsets = [0, 8], sizes = [16, 8], strides = [1, 1]} : vector<16x32xbf16> to vector<16x8xbf16>
    %cst_32 = arith.constant dense<0.000000e+00> : vector<8x16xf32>
    %108 = tpu.matmul %105, %106, %cst_32 {dimension_numbers = #tpu.dot_dimension_numbers<[1], [1], [0], [0], [0, 0, 1, 0], [], []>} : vector<8x8xbf16>, vector<16x8xbf16>, vector<8x16xf32> -> vector<8x16xf32>
    %cst_33 = arith.constant dense<0xFF800000> : vector<8xf32>
    %109 = vector.multi_reduction <maximumf>, %108, %cst_33 [1] : vector<8x16xf32> to vector<8xf32>
    %110 = vector.shape_cast %109 : vector<8xf32> to vector<8x1xf32>
    %111 = vector.broadcast %110 : vector<8x1xf32> to vector<8x16xf32>
    %112 = arith.subf %108, %111 : vector<8x16xf32>
    %113 = math.exp %112 : vector<8x16xf32>
    %cst_34 = arith.constant dense<0.000000e+00> : vector<8xf32>
    %114 = vector.multi_reduction <add>, %113, %cst_34 [1] : vector<8x16xf32> to vector<8xf32>
    %115 = vector.shape_cast %114 : vector<8xf32> to vector<8x1xf32>
    %116 = tpu.reciprocal %115 {approx = true} : vector<8x1xf32> -> vector<8x1xf32>
    %117 = vector.broadcast %116 : vector<8x1xf32> to vector<8x16xf32>
    %118 = arith.mulf %113, %117 : vector<8x16xf32>
    %119 = arith.truncf %118 : vector<8x16xf32> to vector<8x16xbf16>
    %cst_35 = arith.constant dense<0.000000e+00> : vector<8x8xf32>
    %120 = tpu.matmul %119, %107, %cst_35 {dimension_numbers = #tpu.dot_dimension_numbers<[1], [0], [0], [1], [0, 0, 1, 1], [], []>} : vector<8x16xbf16>, vector<16x8xbf16>, vector<8x8xf32> -> vector<8x8xf32>
    %121 = vector.extract_strided_slice %86 {offsets = [0, 16], sizes = [8, 8], strides = [1, 1]} : vector<8x32xbf16> to vector<8x8xbf16>
    %122 = vector.extract_strided_slice %87 {offsets = [0, 16], sizes = [16, 8], strides = [1, 1]} : vector<16x32xbf16> to vector<16x8xbf16>
    %123 = vector.extract_strided_slice %88 {offsets = [0, 16], sizes = [16, 8], strides = [1, 1]} : vector<16x32xbf16> to vector<16x8xbf16>
    %cst_36 = arith.constant dense<0.000000e+00> : vector<8x16xf32>
    %124 = tpu.matmul %121, %122, %cst_36 {dimension_numbers = #tpu.dot_dimension_numbers<[1], [1], [0], [0], [0, 0, 1, 0], [], []>} : vector<8x8xbf16>, vector<16x8xbf16>, vector<8x16xf32> -> vector<8x16xf32>
    %cst_37 = arith.constant dense<0xFF800000> : vector<8xf32>
    %125 = vector.multi_reduction <maximumf>, %124, %cst_37 [1] : vector<8x16xf32> to vector<8xf32>
    %126 = vector.shape_cast %125 : vector<8xf32> to vector<8x1xf32>
    %127 = vector.broadcast %126 : vector<8x1xf32> to vector<8x16xf32>
    %128 = arith.subf %124, %127 : vector<8x16xf32>
    %129 = math.exp %128 : vector<8x16xf32>
    %cst_38 = arith.constant dense<0.000000e+00> : vector<8xf32>
    %130 = vector.multi_reduction <add>, %129, %cst_38 [1] : vector<8x16xf32> to vector<8xf32>
    %131 = vector.shape_cast %130 : vector<8xf32> to vector<8x1xf32>
    %132 = tpu.reciprocal %131 {approx = true} : vector<8x1xf32> -> vector<8x1xf32>
    %133 = vector.broadcast %132 : vector<8x1xf32> to vector<8x16xf32>
    %134 = arith.mulf %129, %133 : vector<8x16xf32>
    %135 = arith.truncf %134 : vector<8x16xf32> to vector<8x16xbf16>
    %cst_39 = arith.constant dense<0.000000e+00> : vector<8x8xf32>
    %136 = tpu.matmul %135, %123, %cst_39 {dimension_numbers = #tpu.dot_dimension_numbers<[1], [0], [0], [1], [0, 0, 1, 1], [], []>} : vector<8x16xbf16>, vector<16x8xbf16>, vector<8x8xf32> -> vector<8x8xf32>
    %137 = vector.extract_strided_slice %86 {offsets = [0, 24], sizes = [8, 8], strides = [1, 1]} : vector<8x32xbf16> to vector<8x8xbf16>
    %138 = vector.extract_strided_slice %87 {offsets = [0, 24], sizes = [16, 8], strides = [1, 1]} : vector<16x32xbf16> to vector<16x8xbf16>
    %139 = vector.extract_strided_slice %88 {offsets = [0, 24], sizes = [16, 8], strides = [1, 1]} : vector<16x32xbf16> to vector<16x8xbf16>
    %cst_40 = arith.constant dense<0.000000e+00> : vector<8x16xf32>
    %140 = tpu.matmul %137, %138, %cst_40 {dimension_numbers = #tpu.dot_dimension_numbers<[1], [1], [0], [0], [0, 0, 1, 0], [], []>} : vector<8x8xbf16>, vector<16x8xbf16>, vector<8x16xf32> -> vector<8x16xf32>
    %cst_41 = arith.constant dense<0xFF800000> : vector<8xf32>
    %141 = vector.multi_reduction <maximumf>, %140, %cst_41 [1] : vector<8x16xf32> to vector<8xf32>
    %142 = vector.shape_cast %141 : vector<8xf32> to vector<8x1xf32>
    %143 = vector.broadcast %142 : vector<8x1xf32> to vector<8x16xf32>
    %144 = arith.subf %140, %143 : vector<8x16xf32>
    %145 = math.exp %144 : vector<8x16xf32>
    %cst_42 = arith.constant dense<0.000000e+00> : vector<8xf32>
    %146 = vector.multi_reduction <add>, %145, %cst_42 [1] : vector<8x16xf32> to vector<8xf32>
    %147 = vector.shape_cast %146 : vector<8xf32> to vector<8x1xf32>
    %148 = tpu.reciprocal %147 {approx = true} : vector<8x1xf32> -> vector<8x1xf32>
    %149 = vector.broadcast %148 : vector<8x1xf32> to vector<8x16xf32>
    %150 = arith.mulf %145, %149 : vector<8x16xf32>
    %151 = arith.truncf %150 : vector<8x16xf32> to vector<8x16xbf16>
    %cst_43 = arith.constant dense<0.000000e+00> : vector<8x8xf32>
    %152 = tpu.matmul %151, %139, %cst_43 {dimension_numbers = #tpu.dot_dimension_numbers<[1], [0], [0], [1], [0, 0, 1, 1], [], []>} : vector<8x16xbf16>, vector<16x8xbf16>, vector<8x8xf32> -> vector<8x8xf32>
    %153 = tpu.concatenate %104, %120, %136, %152 in 1 : vector<8x8xf32>, vector<8x8xf32>, vector<8x8xf32>, vector<8x8xf32> -> vector<8x32xf32>
    %154 = tpu.concatenate %85, %153 in 0 : vector<8x32xf32>, vector<8x32xf32> -> vector<16x32xf32>
    %155 = arith.truncf %154 : vector<16x32xf32> to vector<16x32xbf16>
    %c0_44 = arith.constant 0 : index
    %c0_45 = arith.constant 0 : index
    %156 = vector.load %arg7[%c0_44, %c0_45] : memref<32x32xbf16, #tpu.memory_space<vmem>>, vector<32x32xbf16>
    %cst_46 = arith.constant dense<0.000000e+00> : vector<16x32xf32>
    %157 = tpu.matmul %155, %156, %cst_46 {dimension_numbers = #tpu.dot_dimension_numbers<[1], [0], [0], [1], [0, 0, 1, 1], [], []>} : vector<16x32xbf16>, vector<32x32xbf16>, vector<16x32xf32> -> vector<16x32xf32>
    %c0_47 = arith.constant 0 : index
    %c0_48 = arith.constant 0 : index
    %158 = vector.load %arg8[%c0_47, %c0_48] : memref<1x32xf32, #tpu.memory_space<vmem>>, vector<1x32xf32>
    %159 = vector.broadcast %158 : vector<1x32xf32> to vector<16x32xf32>
    %160 = arith.addf %157, %159 : vector<16x32xf32>
    %161 = arith.addf %160, %0 : vector<16x32xf32>
    %cst_49 = arith.constant dense<0.000000e+00> : vector<16xf32>
    %162 = vector.multi_reduction <add>, %161, %cst_49 [1] : vector<16x32xf32> to vector<16xf32>
    %163 = vector.shape_cast %162 : vector<16xf32> to vector<16x1xf32>
    %cst_50 = arith.constant 3.200000e+01 : f32
    %164 = vector.broadcast %cst_50 : f32 to vector<16x1xf32>
    %165 = arith.divf %163, %164 : vector<16x1xf32>
    %166 = vector.broadcast %165 : vector<16x1xf32> to vector<16x32xf32>
    %167 = arith.subf %161, %166 : vector<16x32xf32>
    %168 = arith.mulf %167, %167 : vector<16x32xf32>
    %cst_51 = arith.constant dense<0.000000e+00> : vector<16xf32>
    %169 = vector.multi_reduction <add>, %168, %cst_51 [1] : vector<16x32xf32> to vector<16xf32>
    %170 = vector.shape_cast %169 : vector<16xf32> to vector<16x1xf32>
    %cst_52 = arith.constant 3.200000e+01 : f32
    %171 = vector.broadcast %cst_52 : f32 to vector<16x1xf32>
    %172 = arith.divf %170, %171 : vector<16x1xf32>
    %173 = vector.broadcast %165 : vector<16x1xf32> to vector<16x32xf32>
    %174 = arith.subf %161, %173 : vector<16x32xf32>
    %cst_53 = arith.constant 9.99999974E-6 : f32
    %175 = vector.broadcast %cst_53 : f32 to vector<16x1xf32>
    %176 = arith.addf %172, %175 : vector<16x1xf32>
    %177 = math.rsqrt %176 : vector<16x1xf32>
    %178 = vector.broadcast %177 : vector<16x1xf32> to vector<16x32xf32>
    %179 = arith.mulf %174, %178 : vector<16x32xf32>
    %c0_54 = arith.constant 0 : index
    %c0_55 = arith.constant 0 : index
    %180 = vector.load %arg9[%c0_54, %c0_55] : memref<1x32xf32, #tpu.memory_space<vmem>>, vector<1x32xf32>
    %181 = vector.broadcast %180 : vector<1x32xf32> to vector<16x32xf32>
    %182 = arith.mulf %179, %181 : vector<16x32xf32>
    %c0_56 = arith.constant 0 : index
    %c0_57 = arith.constant 0 : index
    %183 = vector.load %arg10[%c0_56, %c0_57] : memref<1x32xf32, #tpu.memory_space<vmem>>, vector<1x32xf32>
    %184 = vector.broadcast %183 : vector<1x32xf32> to vector<16x32xf32>
    %185 = arith.addf %182, %184 : vector<16x32xf32>
    %186 = arith.truncf %185 : vector<16x32xf32> to vector<16x32xbf16>
    %c0_58 = arith.constant 0 : index
    %c0_59 = arith.constant 0 : index
    %187 = vector.load %arg11[%c0_58, %c0_59] : memref<32x64xbf16, #tpu.memory_space<vmem>>, vector<32x64xbf16>
    %cst_60 = arith.constant dense<0.000000e+00> : vector<16x64xf32>
    %188 = tpu.matmul %186, %187, %cst_60 {dimension_numbers = #tpu.dot_dimension_numbers<[1], [0], [0], [1], [0, 0, 1, 1], [], []>} : vector<16x32xbf16>, vector<32x64xbf16>, vector<16x64xf32> -> vector<16x64xf32>
    %c0_61 = arith.constant 0 : index
    %c0_62 = arith.constant 0 : index
    %189 = vector.load %arg12[%c0_61, %c0_62] : memref<1x64xf32, #tpu.memory_space<vmem>>, vector<1x64xf32>
    %190 = vector.broadcast %189 : vector<1x64xf32> to vector<16x64xf32>
    %191 = arith.addf %188, %190 : vector<16x64xf32>
    %cst_63 = arith.constant 5.000000e-01 : f32
    %192 = vector.broadcast %cst_63 : f32 to vector<16x64xf32>
    %193 = arith.mulf %192, %191 : vector<16x64xf32>
    %194 = arith.mulf %191, %191 : vector<16x64xf32>
    %195 = arith.mulf %194, %191 : vector<16x64xf32>
    %cst_64 = arith.constant 4.471500e-02 : f32
    %196 = vector.broadcast %cst_64 : f32 to vector<16x64xf32>
    %197 = arith.mulf %196, %195 : vector<16x64xf32>
    %198 = arith.addf %191, %197 : vector<16x64xf32>
    %cst_65 = arith.constant 0.797884583 : f32
    %199 = vector.broadcast %cst_65 : f32 to vector<16x64xf32>
    %200 = arith.mulf %199, %198 : vector<16x64xf32>
    %201 = math.tanh %200 : vector<16x64xf32>
    %cst_66 = arith.constant 1.000000e+00 : f32
    %202 = vector.broadcast %cst_66 : f32 to vector<16x64xf32>
    %203 = arith.addf %202, %201 : vector<16x64xf32>
    %204 = arith.mulf %193, %203 : vector<16x64xf32>
    %205 = arith.truncf %204 : vector<16x64xf32> to vector<16x64xbf16>
    %c0_67 = arith.constant 0 : index
    %c0_68 = arith.constant 0 : index
    %206 = vector.load %arg13[%c0_67, %c0_68] : memref<64x32xbf16, #tpu.memory_space<vmem>>, vector<64x32xbf16>
    %cst_69 = arith.constant dense<0.000000e+00> : vector<16x32xf32>
    %207 = tpu.matmul %205, %206, %cst_69 {dimension_numbers = #tpu.dot_dimension_numbers<[1], [0], [0], [1], [0, 0, 1, 1], [], []>} : vector<16x64xbf16>, vector<64x32xbf16>, vector<16x32xf32> -> vector<16x32xf32>
    %c0_70 = arith.constant 0 : index
    %c0_71 = arith.constant 0 : index
    %208 = vector.load %arg14[%c0_70, %c0_71] : memref<1x32xf32, #tpu.memory_space<vmem>>, vector<1x32xf32>
    %209 = vector.broadcast %208 : vector<1x32xf32> to vector<16x32xf32>
    %210 = arith.addf %207, %209 : vector<16x32xf32>
    %211 = arith.addf %210, %161 : vector<16x32xf32>
    %c0_72 = arith.constant 0 : index
    %c0_73 = arith.constant 0 : index
    %212 = vector.load %arg15[%c0_72, %c0_73] : memref<16x32xf32, #tpu.memory_space<vmem>>, vector<16x32xf32>
    tpu.vector_store %arg15[%c0_72, %c0_73], %211 {strides = array<i32>} : memref<16x32xf32, #tpu.memory_space<vmem>>, vector<16x32xf32>,
    return
  }
  func.func @transform_0(%arg0: i32) -> (i32, i32) {
    %c0_i32 = arith.constant 0 : i32
    %c0_i32_0 = arith.constant 0 : i32
    return %arg0, %c0_i32 : i32, i32
  }
  func.func @transform_1(%arg0: i32) -> (i32, i32) {
    %c0_i32 = arith.constant 0 : i32
    %c0_i32_0 = arith.constant 0 : i32
    return %arg0, %c0_i32 : i32, i32
  }
  func.func @transform_2(%arg0: i32) -> (i32, i32) {
    %c0_i32 = arith.constant 0 : i32
    %c0_i32_0 = arith.constant 0 : i32
    %c0_i32_1 = arith.constant 0 : i32
    return %c0_i32, %c0_i32_0 : i32, i32
  }
  func.func @transform_3(%arg0: i32) -> (i32, i32) {
    %c0_i32 = arith.constant 0 : i32
    %c0_i32_0 = arith.constant 0 : i32
    %c0_i32_1 = arith.constant 0 : i32
    return %c0_i32, %c0_i32_0 : i32, i32
  }
  func.func @transform_4(%arg0: i32) -> (i32, i32) {
    %c0_i32 = arith.constant 0 : i32
    %c0_i32_0 = arith.constant 0 : i32
    %c0_i32_1 = arith.constant 0 : i32
    return %c0_i32, %c0_i32_0 : i32, i32
  }
  func.func @transform_5(%arg0: i32) -> (i32, i32) {
    %c0_i32 = arith.constant 0 : i32
    %c0_i32_0 = arith.constant 0 : i32
    %c0_i32_1 = arith.constant 0 : i32
    return %c0_i32, %c0_i32_0 : i32, i32
  }
  func.func @transform_6(%arg0: i32) -> (i32, i32) {
    %c0_i32 = arith.constant 0 : i32
    %c0_i32_0 = arith.constant 0 : i32
    %c0_i32_1 = arith.constant 0 : i32
    return %c0_i32, %c0_i32_0 : i32, i32
  }
  func.func @transform_7(%arg0: i32) -> (i32, i32) {
    %c0_i32 = arith.constant 0 : i32
    %c0_i32_0 = arith.constant 0 : i32
    %c0_i32_1 = arith.constant 0 : i32
    return %c0_i32, %c0_i32_0 : i32, i32
  }
  func.func @transform_8(%arg0: i32) -> (i32, i32) {
    %c0_i32 = arith.constant 0 : i32
    %c0_i32_0 = arith.constant 0 : i32
    %c0_i32_1 = arith.constant 0 : i32
    return %c0_i32, %c0_i32_0 : i32, i32
  }
  func.func @transform_9(%arg0: i32) -> (i32, i32) {
    %c0_i32 = arith.constant 0 : i32
    %c0_i32_0 = arith.constant 0 : i32
    %c0_i32_1 = arith.constant 0 : i32
    return %c0_i32, %c0_i32_0 : i32, i32
  }
  func.func @transform_10(%arg0: i32) -> (i32, i32) {
    %c0_i32 = arith.constant 0 : i32
    %c0_i32_0 = arith.constant 0 : i32
    %c0_i32_1 = arith.constant 0 : i32
    return %c0_i32, %c0_i32_0 : i32, i32
  }
  func.func @transform_11(%arg0: i32) -> (i32, i32) {
    %c0_i32 = arith.constant 0 : i32
    %c0_i32_0 = arith.constant 0 : i32
    %c0_i32_1 = arith.constant 0 : i32
    return %c0_i32, %c0_i32_0 : i32, i32
  }
  func.func @transform_12(%arg0: i32) -> (i32, i32) {
    %c0_i32 = arith.constant 0 : i32
    %c0_i32_0 = arith.constant 0 : i32
    %c0_i32_1 = arith.constant 0 : i32
    return %c0_i32, %c0_i32_0 : i32, i32
  }
  func.func @transform_13(%arg0: i32) -> (i32, i32) {
    %c0_i32 = arith.constant 0 : i32
    %c0_i32_0 = arith.constant 0 : i32
    %c0_i32_1 = arith.constant 0 : i32
    return %c0_i32, %c0_i32_0 : i32, i32
  }
  func.func @transform_14(%arg0: i32) -> (i32, i32) {
    %c0_i32 = arith.constant 0 : i32
    %c0_i32_0 = arith.constant 0 : i32
    return %arg0, %c0_i32 : i32, i32
  }
}

</mosaic_0001>

<bundles_post_ra>
// kernel: perceiver_attention.1
= control target key start
LH: loop header
LB: loop body
LE: loop exit
PB: predicated region body
PF: predicated region fallthrough
CT: control target
= control target key end

     0   :  { %v1715_v0 = vmov 0.0   ;;  %vm1716_vm0 = vmmov 0   ;;  %vm78_vm1 = vcmask 261120   ;;  %vm214_vm2 = vcmask 64512   ;;  %s1718_s29 = smov 120   ;;  %s1720_s30 = smov 88   ;;  %s2084_s2 = inlined_call_operand.vmem [shape: bf16[32,32], index: 2, kind: input, shape index: {}]   ;;  %s2085_s0 = inlined_call_operand.vmem [shape: f32[16,32], index: 0, kind: input, shape index: {}]   ;;  %s2086_s4 = inlined_call_operand.vmem [shape: bf16[32,64], index: 4, kind: input, shape index: {}]   ;;  %s2087_s1 = inlined_call_operand.vmem [shape: bf16[32,32], index: 1, kind: input, shape index: {}]   ;;  %s2088_s3 = inlined_call_operand.vmem [shape: f32[1,32], index: 3, kind: input, shape index: {}]   ;;  %s2089_s5 = inlined_call_operand.vmem [shape: f32[1,64], index: 5, kind: input, shape index: {}]   ;;  %s2090_s6 = inlined_call_operand.vmem [shape: bf16[32,32], index: 6, kind: input, shape index: {}]   ;;  %s2091_s7 = inlined_call_operand.vmem [shape: f32[1,32], index: 7, kind: input, shape index: {}]   ;;  %s2092_s10 = inlined_call_operand.vmem [shape: bf16[32,64], index: 10, kind: input, shape index: {}]   ;;  %s2093_s8 = inlined_call_operand.vmem [shape: f32[1,32], index: 8, kind: input, shape index: {}]   ;;  %s2094_s9 = inlined_call_operand.vmem [shape: f32[1,32], index: 9, kind: input, shape index: {}]   ;;  %s2095_s12 = inlined_call_operand.vmem [shape: bf16[64,32], index: 12, kind: input, shape index: {}]   ;;  %s2096_s11 = inlined_call_operand.vmem [shape: f32[1,64], index: 11, kind: input, shape index: {}]   ;;  %s2097_s13 = inlined_call_operand.vmem [shape: f32[1,32], index: 13, kind: input, shape index: {}]   ;;  %s2098_s14 = inlined_call_operand.vmem [shape: f32[16,32], index: 14, kind: output, shape index: {}]  }
   0x1   :  { %1494 = vmatprep.subr.bf16.mxu1 %v1715_v0  ;;  %v1661_v1 = vld [vmem:[%s2084_s2] sm:$0xff]   ;;  %1498 = vmatprep.mubr.msk.bf16.mxu1 %vm1716_vm0, %v1715_v0  ;;  %v1662_v2 = vld [vmem:[%s2084_s2 + $0x8] sm:$0xff]   ;;  %vm261_vm3 = vcmask 130048   ;;  %s1721_s15 = smov 96   ;;  %s1722_s16 = smov 80   ;;  %vm660_vm4 = vcmask 195584  }
   0x2   :  { %1510 = vmatprep.subr.bf16.mxu0 %v1715_v0  ;;  %1512 = vmatprep.mubr.msk.bf16.mxu0 %vm1716_vm0, %v1715_v0  ;;  %v1817_v3 = vld [vmem:[%s2085_s0] sm:$0xff]  ;;  %v1822_v4 = vld [vmem:[%s2085_s0 + $0x8] sm:$0xff]  ;;  %s1723_s17 = smov 72   ;;  %s1724_s20 = smov 8   ;;  %vm1348_vm5 = vcmask 523264  }
   0x3   :  { %1495 = vmatpush3.bf16.msra.mxu1 %v1661_v1  ;;  %v1663_v5 = vld [vmem:[%s2086_s4] sm:$0xff]   ;;  %v50_v6 = vpack.c.bf16 %v1822_v4, %v1817_v3  ;;  %v1664_v8 = vld [vmem:[%s2086_s4 + $0x8] sm:$0xff]   ;;  %s1725_s22 = smov 16   ;;  %s1726_s23 = smov 24  }
   0x4   :  { %1496 = vmatprep.subr.bf16.mxu1 %v1715_v0  ;;  %v1665_v7 = vld [vmem:[%s2087_s1] sm:$0xff]   ;;  %v1666_v9 = vld [vmem:[%s2087_s1 + $0x8] sm:$0xff]  }
   0x5   :  { %v1401_v10 = vld [vmem:[%s2088_s3] ss:$0 sm:$0xff]  ;;  %s1717_s3 = smov 112  }
   0x6   :  { %v1405_v19 = vld [vmem:[%s2089_s5] ss:$0 sm:$0xff]  ;;  %s1719_s5 = smov 104  }
   0x7   :  { %1497 = vmatpush3.bf16.msra.mxu1 %v1662_v2 }
   0x8   :  { %1502 = vmatprep.subr.bf16.mxu1 %v1663_v5 }
   0xa   :  { %1499 = vmatmul.mubr.msk.bf16.vlgmr.msra.gmra.mrb[0].mxu1 %vm78_vm1, %v50_v6 }
   0xb   :  { %1503 = vmatpush3.bf16.msra.mxu1 %v1663_v5  ;;  %1506 = vmatprep.mubr.msk.bf16.mxu1 %vm78_vm1, %v1665_v7 }
   0xc   :  { %1504 = vmatprep.subr.bf16.mxu1 %v1664_v8 }
   0xf   :  { %1505 = vmatpush3.bf16.msra.mxu1 %v1664_v8 }
  0x10   :  { %1516 = vmatprep.subr.bf16.mxu1 %v1715_v0 }
  0x12   :  { %1507 = vmatmul.mubr.msk.bf16.vlgmr.msra.gmra.mrb[4].mxu1 %vm78_vm1, %v1666_v9 }
  0x13   :  { %1518 = vmatprep.mubr.msk.bf16.mxu1 %vm1716_vm0, %v1715_v0 }
  0xdd   :  { %v116_v11 = vpop.f32.mrb[0].mxu1 }
  0xde   :  { %v1500_v12 = vpop.f32.mrb[1].mxu1  ;;  %v117_v14 = vadd.f32 %v1401_v10, %v116_v11 }
  0xdf   :  { %v119_v13 = vpop.f32.mrb[2].mxu1 }
  0xe0   :  { %v120_v15 = vadd.f32 %v1401_v10, %v119_v13  ;;  %v1501_v16 = vpop.f32.mrb[3].mxu1 }
  0xe2   :  { %v211_v17 = vpack.c.bf16 %v120_v15, %v117_v14 }
  0xe4   :  { %v662_v30 = vrot.slane %v211_v17, 4 }
  0xe5   :  { %v1508_v18 = vpop.f32.mrb[4].mxu1 }
  0xe6   :  { %v196_v20 = vpop.f32.mrb[5].mxu1  ;;  %v205_v22 = vadd.f32 %v1508_v18, %v1405_v19 }
  0xe7   :  { %v1509_v21 = vpop.f32.mrb[6].mxu1  ;;  %v197_v25 = vadd.f32 %v1405_v19, %v196_v20 }
  0xe8   :  { %v208_v23 = vadd.f32 %v1509_v21, %v1405_v19  ;;  %v199_v24 = vpop.f32.mrb[7].mxu1 }
  0xe9   :  { %v200_v26 = vadd.f32 %v1405_v19, %v199_v24 }
  0xea   :  { %v1851_v27 = vpack.c.bf16 %v208_v23, %v205_v22 }
  0xeb   :  { %v1853_v28 = vpack.c.bf16 %v200_v26, %v197_v25 }
  0xec   :  { %v667_v40 = vsel %vm214_vm2, %v1851_v27, 0 }
  0xed   :  { %432 = vrot.lane.b32.xlu1 %v1853_v28, %s1717_s3  ;;  %324 = vrot.lane.b32.xlu0 %v1853_v28, %s1718_s29  ;;  %v219_v29 = vsel %vm214_vm2, %v1853_v28, 0 }
  0xee   :  { %1511 = vmatpush3.bf16.xpose.msra.mxu0 %v219_v29 }
  0xef   :  { %1522 = vmatprep.subr.bf16.mxu0 %v1715_v0 }
  0xf1   :  { %430 = vrot.lane.b32.xlu1 %v211_v17, %s1717_s3  ;;  %322 = vrot.lane.b32.xlu0 %v211_v17, %s1718_s29 }
  0xf5   :  { %538 = vrot.lane.b32.xlu1 %v211_v17, %s1719_s5  ;;  %540 = vrot.lane.b32.xlu0 %v1853_v28, %s1719_s5 }
  0xf6   :  { %1513 = vmatmul.mubr.msk.bf16.vlgmr.msra.gmra.mrb[0].mxu0 %vm214_vm2, %v211_v17 }
  0xf7   :  { %1524 = vmatprep.mubr.msk.bf16.mxu0 %vm1716_vm0, %v1715_v0 }
  0xf9   :  { %768 = vrot.lane.b32.xlu1 %v662_v30, %s1718_s29  ;;  %770 = vrot.lane.b32.xlu0 %v1851_v27, %s1718_s29 }
  0xfd   :  { %876 = vrot.lane.b32.xlu1 %v662_v30, %s1717_s3  ;;  %878 = vrot.lane.b32.xlu0 %v1851_v27, %s1717_s3 }
 0x101   :  { %984 = vrot.lane.b32.xlu1 %v662_v30, %s1719_s5  ;;  %986 = vrot.lane.b32.xlu0 %v1851_v27, %s1719_s5 }
 0x15f   :  { %v325_v31 = vpop.permute.xlu0 %324  ;;  %v433_v33 = vpop.permute.xlu1 %432 }
 0x160   :  { %v330_v32 = vsel %vm214_vm2, %v325_v31, 0  ;;  %v438_v35 = vsel %vm214_vm2, %v433_v33, 0 }
 0x161   :  { %1523 = vmatpush3.bf16.xpose.msra.mxu0 %v330_v32 }
 0x162   :  { %1534 = vmatprep.subr.bf16.mxu0 %v1715_v0 }
 0x163   :  { %v323_v34 = vpop.permute.xlu0 %322  ;;  %v431_v37 = vpop.permute.xlu1 %430 }
 0x167   :  { %v541_v36 = vpop.permute.xlu0 %540  ;;  %v539_v39 = vpop.permute.xlu1 %538 }
 0x168   :  { %1525 = vmatmul.mubr.msk.bf16.vlgmr.msra.gmra.mrb[4].mxu0 %vm214_vm2, %v323_v34  ;;  %v546_v38 = vsel %vm214_vm2, %v541_v36, 0 }
 0x169   :  { %1535 = vmatpush3.bf16.xpose.msra.mxu0 %v438_v35  ;;  %1536 = vmatprep.mubr.msk.bf16.mxu0 %vm1716_vm0, %v1715_v0 }
 0x16a   :  { %1546 = vmatprep.subr.bf16.mxu0 %v1715_v0 }
 0x16b   :  { %v771_v41 = vpop.permute.xlu0 %770  ;;  %v769_v44 = vpop.permute.xlu1 %768 }
 0x16c   :  { %v776_v42 = vsel %vm214_vm2, %v771_v41, 0 }
 0x16f   :  { %v879_v43 = vpop.permute.xlu0 %878  ;;  %v877_v47 = vpop.permute.xlu1 %876 }
 0x170   :  { %1537 = vmatmul.mubr.msk.bf16.vlgmr.msra.gmra.mrb[8].mxu0 %vm214_vm2, %v431_v37  ;;  %v884_v45 = vsel %vm214_vm2, %v879_v43, 0 }
 0x171   :  { %1547 = vmatpush3.bf16.xpose.msra.mxu0 %v546_v38  ;;  %1548 = vmatprep.mubr.msk.bf16.mxu0 %vm1716_vm0, %v1715_v0 }
 0x172   :  { %1558 = vmatprep.subr.bf16.mxu0 %v1715_v0 }
 0x173   :  { %v987_v46 = vpop.permute.xlu0 %986  ;;  %v985_v49 = vpop.permute.xlu1 %984 }
 0x174   :  { %v992_v48 = vsel %vm214_vm2, %v987_v46, 0 }
 0x178   :  { %1549 = vmatmul.mubr.msk.bf16.vlgmr.msra.gmra.mrb[12].mxu0 %vm214_vm2, %v539_v39 }
 0x179   :  { %1559 = vmatpush3.bf16.xpose.msra.mxu0 %v667_v40  ;;  %1560 = vmatprep.mubr.msk.bf16.mxu0 %vm1716_vm0, %v1715_v0 }
 0x17a   :  { %1570 = vmatprep.subr.bf16.mxu0 %v1715_v0 }
 0x180   :  { %1561 = vmatmul.mubr.msk.bf16.vlgmr.msra.gmra.mrb[16].mxu0 %vm214_vm2, %v662_v30 }
 0x181   :  { %1571 = vmatpush3.bf16.xpose.msra.mxu0 %v776_v42  ;;  %1572 = vmatprep.mubr.msk.bf16.mxu0 %vm1716_vm0, %v1715_v0 }
 0x182   :  { %1582 = vmatprep.subr.bf16.mxu0 %v1715_v0 }
 0x188   :  { %1573 = vmatmul.mubr.msk.bf16.vlgmr.msra.gmra.mrb[20].mxu0 %vm214_vm2, %v769_v44 }
 0x189   :  { %1583 = vmatpush3.bf16.xpose.msra.mxu0 %v884_v45  ;;  %1584 = vmatprep.mubr.msk.bf16.mxu0 %vm1716_vm0, %v1715_v0 }
 0x18a   :  { %1594 = vmatprep.subr.bf16.mxu0 %v1715_v0 }
 0x190   :  { %1585 = vmatmul.mubr.msk.bf16.vlgmr.msra.gmra.mrb[24].mxu0 %vm214_vm2, %v877_v47 }
 0x191   :  { %1595 = vmatpush3.bf16.xpose.msra.mxu0 %v992_v48  ;;  %1596 = vmatprep.mubr.msk.bf16.mxu0 %vm1716_vm0, %v1715_v0 }
 0x192   :  { %1606 = vmatprep.subr.bf16.mxu0 %v1715_v0 }
 0x198   :  { %1597 = vmatmul.mubr.msk.bf16.vlgmr.msra.gmra.mrb[28].mxu0 %vm214_vm2, %v985_v49 }
 0x199   :  { %1610 = vmatprep.mubr.msk.bf16.mxu0 %vm1716_vm0, %v1715_v0 }
 0x1c9   :  { %v255_v50 = vpop.f32.mrb[0].mxu0 }
 0x1ca   :  { %v1514_v51 = vpop.f32.mrb[1].mxu0  ;;  %v262_v52 = vsel %vm261_vm3, %v255_v50, -inf }
 0x1cb   :  { %263 = vmax.xlane.f32.xlu0 %v262_v52  ;;  %v258_v53 = vpop.f32.mrb[2].mxu0 }
 0x1cc   :  { %v1515_v54 = vpop.f32.mrb[3].mxu0 }
 0x23b   :  { %v366_v55 = vpop.f32.mrb[4].mxu0 }
 0x23c   :  { %v1526_v56 = vpop.f32.mrb[5].mxu0  ;;  %v372_v57 = vsel %vm261_vm3, %v366_v55, -inf }
 0x23d   :  { %373 = vmax.xlane.f32.xlu1 %v372_v57  ;;  %v369_v58 = vpop.f32.mrb[6].mxu0 }
 0x23e   :  { %v1527_v59 = vpop.f32.mrb[7].mxu0 }
 0x243   :  { %v474_v60 = vpop.f32.mrb[8].mxu0 }
 0x244   :  { %v1538_v61 = vpop.f32.mrb[9].mxu0  ;;  %v480_v62 = vsel %vm261_vm3, %v474_v60, -inf }
 0x245   :  { %481 = vmax.xlane.f32.xlu0 %v480_v62  ;;  %v477_v63 = vpop.f32.mrb[10].mxu0 }
 0x246   :  { %v1539_v1 = vpop.f32.mrb[11].mxu0 }
 0x24b   :  { %v1906_v2 = vpop.f32.mrb[12].mxu0 }
 0x24c   :  { %v1550_v5 = vpop.f32.mrb[13].mxu0  ;;  %v588_v6 = vsel %vm261_vm3, %v1906_v2, -inf }
 0x24d   :  { %589 = vmax.xlane.f32.xlu0 %v588_v6  ;;  %v585_v7 = vpop.f32.mrb[14].mxu0 }
 0x24e   :  { %v1551_v8 = vpop.f32.mrb[15].mxu0 }
 0x253   :  { %v1910_v9 = vpop.f32.mrb[16].mxu0 }
 0x254   :  { %v1562_v10 = vpop.f32.mrb[17].mxu0  ;;  %v709_v11 = vsel %vm261_vm3, %v1910_v9, -inf }
 0x255   :  { %710 = vmax.xlane.f32.xlu1 %v709_v11  ;;  %v706_v12 = vpop.f32.mrb[18].mxu0 }
 0x256   :  { %v1563_v13 = vpop.f32.mrb[19].mxu0 }
 0x258   :  { %v264_v30 = vpop.xlane.xlu0 %263 }
 0x259   :  { %v265_v31 = vsub.f32 %v255_v50, %v264_v30 }
 0x25b   :  { %v812_v14 = vpop.f32.mrb[20].mxu0  ;;  %v266_v32 = vmul.f32 1.442695, %v265_v31 }
 0x25c   :  { %v1574_v15 = vpop.f32.mrb[21].mxu0  ;;  %v818_v16 = vsel %vm261_vm3, %v812_v14, -inf }
 0x25d   :  { %819 = vmax.xlane.f32.xlu0 %v818_v16  ;;  %v815_v17 = vpop.f32.mrb[22].mxu0  ;;  %1675 = vpow2.f32 %v266_v32 }
 0x25e   :  { %v1575_v18 = vpop.f32.mrb[23].mxu0 }
 0x263   :  { %v920_v19 = vpop.f32.mrb[24].mxu0 }
 0x264   :  { %v1586_v20 = vpop.f32.mrb[25].mxu0  ;;  %v926_v21 = vsel %vm261_vm3, %v920_v19, -inf }
 0x265   :  { %927 = vmax.xlane.f32.xlu1 %v926_v21  ;;  %v923_v22 = vpop.f32.mrb[26].mxu0 }
 0x266   :  { %v1587_v23 = vpop.f32.mrb[27].mxu0 }
 0x267   :  { %v1924_v34 = vpop.eup %1675 }
 0x268   :  { %v268_v35 = vsel %vm261_vm3, %v1924_v34, 0.0 }
 0x26b   :  { %v1916_v24 = vpop.f32.mrb[28].mxu0 }
 0x26c   :  { %v1598_v25 = vpop.f32.mrb[29].mxu0  ;;  %v1034_v33 = vsel %vm261_vm3, %v1916_v24, -inf }
 0x26d   :  { %v1031_v26 = vpop.f32.mrb[30].mxu0 }
 0x26e   :  { %v1599_v29 = vpop.f32.mrb[31].mxu0 }
 0x273   :  { %384 = vrot.lane.b32.xlu0 %v1853_v28, %s1720_s30 }
 0x276   :  { %275 = vrot.lane.b32.xlu1 %v1853_v28, %s1721_s15 }
 0x292   :  { %1035 = vmax.xlane.f32.xlu0 %v1034_v33 }
 0x29a   :  { %269 = vadd.xlane.f32.xlu1 %v268_v35 }
 0x2ca   :  { %v374_v36 = vpop.xlane.xlu1 %373 }
 0x2cb   :  { %v375_v37 = vsub.f32 %v366_v55, %v374_v36 }
 0x2cd   :  { %v376_v38 = vmul.f32 1.442695, %v375_v37 }
 0x2cf   :  { %1677 = vpow2.f32 %v376_v38 }
 0x2d2   :  { %v482_v39 = vpop.xlane.xlu0 %481 }
 0x2d3   :  { %v483_v40 = vsub.f32 %v474_v60, %v482_v39 }
 0x2d5   :  { %v484_v41 = vmul.f32 1.442695, %v483_v40 }
 0x2d7   :  { %1679 = vpow2.f32 %v484_v41 }
 0x2d9   :  { %v1928_v42 = vpop.eup %1677 }
 0x2da   :  { %v378_v43 = vsel %vm261_vm3, %v1928_v42, 0.0  ;;  %v590_v49 = vpop.xlane.xlu0 %589 }
 0x2db   :  { %379 = vadd.xlane.f32.xlu0 %v378_v43  ;;  %v591_v50 = vsub.f32 %v1906_v2, %v590_v49 }
 0x2dd   :  { %v592_v51 = vmul.f32 1.442695, %v591_v50 }
 0x2df   :  { %1681 = vpow2.f32 %v592_v51 }
 0x2e1   :  { %v1932_v44 = vpop.eup %1679 }
 0x2e2   :  { %v486_v45 = vsel %vm261_vm3, %v1932_v44, 0.0  ;;  %v711_v46 = vpop.xlane.xlu1 %710 }
 0x2e3   :  { %487 = vadd.xlane.f32.xlu1 %v486_v45  ;;  %v712_v52 = vsub.f32 %v1910_v9, %v711_v46 }
 0x2e5   :  { %v713_v55 = vmul.f32 1.442695, %v712_v52 }
 0x2e7   :  { %1683 = vpow2.f32 %v713_v55 }
 0x2ea   :  { %v820_v53 = vpop.xlane.xlu0 %819 }
 0x2eb   :  { %v821_v54 = vsub.f32 %v812_v14, %v820_v53 }
 0x2ed   :  { %v822_v57 = vmul.f32 1.442695, %v821_v54 }
 0x2ee   :  { %v385_v5 = vpop.permute.xlu0 %384 }
 0x2ef   :  { %1685 = vpow2.f32 %v822_v57 }
 0x2f1   :  { %492 = vrot.lane.b32.xlu0 %v1853_v28, %s1722_s16 }
 0x2f2   :  { %v928_v47 = vpop.xlane.xlu1 %927 }
 0x2f3   :  { %v929_v56 = vsub.f32 %v920_v19, %v928_v47 }
 0x2f4   :  { %600 = vrot.lane.b32.xlu1 %v1853_v28, %s1723_s17  ;;  %v1682_v28 = vpop.eup %1681 }
 0x2f5   :  { %v930_v58 = vmul.f32 1.442695, %v929_v56  ;;  %v594_v59 = vsel %vm261_vm3, %v1682_v28, 0.0  ;;  %v1944_v60 = vpop.eup %1683 }
 0x2f6   :  { %v276_v48 = vpop.permute.xlu1 %275  ;;  %v715_v62 = vsel %vm261_vm3, %v1944_v60, 0.0 }
 0x2f7   :  { %1517 = vmatpush3.bf16.msra.mxu1 %v276_v48  ;;  %1687 = vpow2.f32 %v930_v58 }
 0x2f8   :  { %1528 = vmatprep.subr.bf16.mxu1 %v1715_v0 }
 0x2f9   :  { %v1946_v61 = vpop.eup %1685 }
 0x2fa   :  { %v824_v1 = vsel %vm261_vm3, %v1946_v61, 0.0 }
 0x301   :  { %v1950_v63 = vpop.eup %1687 }
 0x302   :  { %v932_v2 = vsel %vm261_vm3, %v1950_v63, 0.0 }
 0x310   :  { %595 = vadd.xlane.f32.xlu0 %v594_v59 }
 0x314   :  { %716 = vadd.xlane.f32.xlu0 %v715_v62 }
 0x318   :  { %825 = vadd.xlane.f32.xlu1 %v824_v1  ;;  %933 = vadd.xlane.f32.xlu0 %v932_v2 }
 0x31f   :  { %v1036_v6 = vpop.xlane.xlu0 %1035 }
 0x320   :  { %v1037_v7 = vsub.f32 %v1916_v24, %v1036_v6 }
 0x322   :  { %v1038_v8 = vmul.f32 1.442695, %v1037_v7 }
 0x324   :  { %1689 = vpow2.f32 %v1038_v8 }
 0x327   :  { %v270_v9 = vpop.xlane.xlu1 %269 }
 0x328   :  { %1691 = vrcp.f32 %v270_v9 }
 0x329   :  { %830 = vrot.lane.b32.xlu1 %v1851_v27, %s1720_s30 }
 0x32d   :  { %938 = vrot.lane.b32.xlu1 %v1851_v27, %s1722_s16 }
 0x32e   :  { %v1961_v10 = vpop.eup %1689 }
 0x32f   :  { %v1040_v11 = vsel %vm261_vm3, %v1961_v10, 0.0 }
 0x330   :  { %1041 = vadd.xlane.f32.xlu0 %v1040_v11  ;;  %v1667_v11 = vld [vmem:[%s2090_s6] sm:$0xff]  }
 0x331   :  { %1046 = vrot.lane.b32.xlu1 %v1851_v27, %s1723_s17  ;;  %1607 = vmatpush3.bf16.msra.mxu0 %v1667_v11 }
 0x332   :  { %v1692_v12 = vpop.eup %1691  ;;  %1608 = vmatprep.subr.bf16.mxu0 %v1715_v0 }
 0x333   :  { %v272_v13 = vmul.f32 %v1692_v12, %v1924_v34 }
 0x335   :  { %v273_v14 = vpack.c.bf16 %v272_v13, %v272_v13 }
 0x337   :  { %1519 = vmatmul.mubr.msk.bf16.vlgmr.msra.gmra.mrb[8].mxu1 %vm261_vm3, %v273_v14  ;;  %v1668_v14 = vld [vmem:[%s2090_s6 + $0x8] sm:$0xff]  }
 0x338   :  { %1529 = vmatpush3.bf16.msra.mxu1 %v385_v5  ;;  %1530 = vmatprep.mubr.msk.bf16.mxu1 %vm1716_vm0, %v1715_v0 }
 0x339   :  { %1540 = vmatprep.subr.bf16.mxu1 %v1715_v0  ;;  %1609 = vmatpush3.bf16.msra.mxu0 %v1668_v14 }
 0x33a   :  { %1622 = vmatprep.subr.bf16.mxu0 %v1715_v0 }
 0x346   :  { %722 = vrot.lane.b32.xlu0 %v1851_v27, %s1721_s15 }
 0x368   :  { %v380_v15 = vpop.xlane.xlu0 %379 }
 0x369   :  { %1693 = vrcp.f32 %v380_v15 }
 0x36c   :  { %v493_v20 = vpop.permute.xlu0 %492 }
 0x370   :  { %v488_v16 = vpop.xlane.xlu1 %487 }
 0x371   :  { %1695 = vrcp.f32 %v488_v16 }
 0x373   :  { %v1694_v17 = vpop.eup %1693 }
 0x374   :  { %v382_v18 = vmul.f32 %v1694_v17, %v1928_v42  ;;  %v601_v23 = vpop.permute.xlu1 %600 }
 0x376   :  { %v383_v19 = vpack.c.bf16 %v382_v18, %v382_v18 }
 0x378   :  { %1531 = vmatmul.mubr.msk.bf16.vlgmr.msra.gmra.mrb[12].mxu1 %vm261_vm3, %v383_v19 }
 0x379   :  { %1541 = vmatpush3.bf16.msra.mxu1 %v493_v20  ;;  %1542 = vmatprep.mubr.msk.bf16.mxu1 %vm1716_vm0, %v1715_v0 }
 0x37a   :  { %1552 = vmatprep.subr.bf16.mxu1 %v1715_v0 }
 0x37b   :  { %v1696_v21 = vpop.eup %1695 }
 0x37c   :  { %v490_v27 = vmul.f32 %v1696_v21, %v1932_v44 }
 0x37e   :  { %v491_v22 = vpack.c.bf16 %v490_v27, %v490_v27 }
 0x380   :  { %1543 = vmatmul.mubr.msk.bf16.vlgmr.msra.gmra.mrb[16].mxu1 %vm261_vm3, %v491_v22 }
 0x381   :  { %1553 = vmatpush3.bf16.msra.mxu1 %v601_v23  ;;  %1554 = vmatprep.mubr.msk.bf16.mxu1 %vm1716_vm0, %v1715_v0 }
 0x382   :  { %1564 = vmatprep.subr.bf16.mxu1 %v1715_v0 }
 0x39d   :  { %v596_v24 = vpop.xlane.xlu0 %595 }
 0x39e   :  { %1697 = vrcp.f32 %v596_v24 }
 0x3a1   :  { %v717_v30 = vpop.xlane.xlu0 %716 }
 0x3a2   :  { %1699 = vrcp.f32 %v717_v30 }
 0x3a5   :  { %v826_v31 = vpop.xlane.xlu1 %825  ;;  %v934_v32 = vpop.xlane.xlu0 %933 }
 0x3a6   :  { %1701 = vrcp.f32 %v826_v31 }
 0x3a7   :  { %1703 = vrcp.f32 %v934_v32 }
 0x3a8   :  { %v1698_v25 = vpop.eup %1697 }
 0x3a9   :  { %v598_v26 = vmul.f32 %v1698_v25, %v1682_v28  ;;  %v831_v39 = vpop.permute.xlu1 %830 }
 0x3ab   :  { %v599_v29 = vpack.c.bf16 %v598_v26, %v598_v26 }
 0x3ac   :  { %v1700_v33 = vpop.eup %1699 }
 0x3ad   :  { %1555 = vmatmul.mubr.msk.bf16.vlgmr.msra.gmra.mrb[20].mxu1 %vm261_vm3, %v599_v29  ;;  %v719_v35 = vmul.f32 %v1700_v33, %v1944_v60  ;;  %v939_v43 = vpop.permute.xlu1 %938 }
 0x3ae   :  { %1566 = vmatprep.mubr.msk.bf16.mxu1 %vm1716_vm0, %v1715_v0 }
 0x3af   :  { %v720_v37 = vpack.c.bf16 %v719_v35, %v719_v35 }
 0x3b0   :  { %v1702_v38 = vpop.eup %1701 }
 0x3b1   :  { %v828_v40 = vmul.f32 %v1702_v38, %v1946_v61  ;;  %v1704_v42 = vpop.eup %1703  ;;  %v1047_v47 = vpop.permute.xlu1 %1046 }
 0x3b2   :  { %v936_v44 = vmul.f32 %v1704_v42, %v1950_v63  ;;  %v1428_v42 = vld [vmem:[%s2091_s7] ss:$0 sm:$0xff] }
 0x3b3   :  { %v829_v41 = vpack.c.bf16 %v828_v40, %v828_v40 }
 0x3b4   :  { %v937_v45 = vpack.c.bf16 %v936_v44, %v936_v44 }
 0x3bd   :  { %v1042_v34 = vpop.xlane.xlu0 %1041 }
 0x3be   :  { %1705 = vrcp.f32 %v1042_v34 }
 0x3c1   :  { %v723_v36 = vpop.permute.xlu0 %722 }
 0x3c2   :  { %1565 = vmatpush3.bf16.msra.mxu1 %v723_v36 }
 0x3c3   :  { %1576 = vmatprep.subr.bf16.mxu1 %v1715_v0 }
 0x3c5   :  { %1567 = vmatmul.mubr.msk.bf16.vlgmr.msra.gmra.mrb[24].mxu1 %vm261_vm3, %v720_v37 }
 0x3c6   :  { %1577 = vmatpush3.bf16.msra.mxu1 %v831_v39  ;;  %1578 = vmatprep.mubr.msk.bf16.mxu1 %vm1716_vm0, %v1715_v0 }
 0x3c7   :  { %1588 = vmatprep.subr.bf16.mxu1 %v1715_v0 }
 0x3c8   :  { %v1706_v46 = vpop.eup %1705 }
 0x3c9   :  { %v1044_v48 = vmul.f32 %v1706_v46, %v1961_v10 }
 0x3cb   :  { %v1045_v49 = vpack.c.bf16 %v1044_v48, %v1044_v48 }
 0x3cd   :  { %1579 = vmatmul.mubr.msk.bf16.vlgmr.msra.gmra.mrb[28].mxu1 %vm261_vm3, %v829_v41 }
 0x3ce   :  { %1589 = vmatpush3.bf16.msra.mxu1 %v939_v43  ;;  %1590 = vmatprep.mubr.msk.bf16.mxu1 %vm1716_vm0, %v1715_v0 }
 0x3cf   :  { %1600 = vmatprep.subr.bf16.mxu1 %v1715_v0 }
 0x3d5   :  { %1591 = vmatmul.mubr.msk.bf16.vlgmr.msra.gmra.mrb[32].mxu1 %vm261_vm3, %v937_v45 }
 0x3d6   :  { %1601 = vmatpush3.bf16.msra.mxu1 %v1047_v47  ;;  %1602 = vmatprep.mubr.msk.bf16.mxu1 %vm1716_vm0, %v1715_v0 }
 0x3d7   :  { %1614 = vmatprep.subr.bf16.mxu1 %v1715_v0 }
 0x3dd   :  { %1603 = vmatmul.mubr.msk.bf16.vlgmr.msra.gmra.mrb[36].mxu1 %vm261_vm3, %v1045_v49 }
 0x3de   :  { %1618 = vmatprep.mubr.msk.bf16.mxu1 %vm1716_vm0, %v1715_v0 }
 0x40a   :  { %v315_v50 = vpop.f32.mrb[8].mxu1 }
 0x40b   :  { %v1520_v51 = vpop.f32.mrb[9].mxu1 }
 0x40c   :  { %v318_v52 = vpop.f32.mrb[10].mxu1 }
 0x40d   :  { %v1521_v53 = vpop.f32.mrb[11].mxu1 }
 0x44b   :  { %v424_v54 = vpop.f32.mrb[12].mxu1 }
 0x44c   :  { %v1532_v55 = vpop.f32.mrb[13].mxu1 }
 0x44d   :  { %v427_v56 = vpop.f32.mrb[14].mxu1 }
 0x44e   :  { %v1533_v57 = vpop.f32.mrb[15].mxu1 }
 0x453   :  { %v532_v58 = vpop.f32.mrb[16].mxu1 }
 0x454   :  { %v1544_v28 = vpop.f32.mrb[17].mxu1 }
 0x455   :  { %v535_v59 = vpop.f32.mrb[18].mxu1 }
 0x456   :  { %v1545_v60 = vpop.f32.mrb[19].mxu1 }
 0x457   :  { %v1669_v60 = vld [vmem:[%s2092_s10] sm:$0xff]  }
 0x458   :  { %1615 = vmatpush3.bf16.msra.mxu1 %v1669_v60 }
 0x459   :  { %1616 = vmatprep.subr.bf16.mxu1 %v1715_v0 }
 0x480   :  { %v640_v61 = vpop.f32.mrb[20].mxu1 }
 0x481   :  { %v1556_v62 = vpop.f32.mrb[21].mxu1 }
 0x482   :  { %v643_v63 = vpop.f32.mrb[22].mxu1 }
 0x483   :  { %v1557_v1 = vpop.f32.mrb[23].mxu1 }
 0x498   :  { %v762_v2 = vpop.f32.mrb[24].mxu1 }
 0x499   :  { %v1568_v5 = vpop.f32.mrb[25].mxu1 }
 0x49a   :  { %v765_v6 = vpop.f32.mrb[26].mxu1 }
 0x49b   :  { %v1569_v7 = vpop.f32.mrb[27].mxu1 }
 0x4a0   :  { %v870_v8 = vpop.f32.mrb[28].mxu1 }
 0x4a1   :  { %v1646_v9 = vpack.i.bf16 %v870_v8, %v424_v54  ;;  %v1580_v10 = vpop.f32.mrb[29].mxu1  ;;  %v1432_v8 = vld [vmem:[%s2093_s8] ss:$0 sm:$0xff] }
 0x4a2   :  { %v873_v12 = vpop.f32.mrb[30].mxu1 }
 0x4a3   :  { %1647 = vrot.lane.b32.xlu1 %v1646_v9, %s1724_s20  ;;  %v1581_v13 = vpop.f32.mrb[31].mxu1 }
 0x4a4   :  { %v1433_v13 = vld [vmem:[%s2094_s9] ss:$0 sm:$0xff] }
 0x4a8   :  { %v978_v15 = vpop.f32.mrb[32].mxu1 }
 0x4a9   :  { %v1651_v16 = vpack.i.bf16 %v978_v15, %v532_v58  ;;  %v1592_v17 = vpop.f32.mrb[33].mxu1 }
 0x4aa   :  { %v981_v18 = vpop.f32.mrb[34].mxu1 }
 0x4ab   :  { %1652 = vrot.lane.b32.xlu1 %v1651_v16, %s1725_s22  ;;  %v1593_v19 = vpop.f32.mrb[35].mxu1  ;;  %v1671_v18 = vld [vmem:[%s2095_s12] sm:$0xff]  }
 0x4ac   :  { %v1672_v19 = vld [vmem:[%s2095_s12 + $0x8] sm:$0xff]  }
 0x4b0   :  { %v1086_v20 = vpop.f32.mrb[36].mxu1 }
 0x4b1   :  { %v1656_v21 = vpack.i.bf16 %v1086_v20, %v640_v61  ;;  %v1604_v27 = vpop.f32.mrb[37].mxu1  ;;  %v1670_v61 = vld [vmem:[%s2092_s10 + $0x8] sm:$0xff]   ;;  %v1673_v20 = vld [vmem:[%s2095_s12 + $0x10] sm:$0xff]  }
 0x4b2   :  { %v1089_v22 = vpop.f32.mrb[38].mxu1  ;;  %1617 = vmatpush3.bf16.msra.mxu1 %v1670_v61  ;;  %v1434_v27 = vld [vmem:[%s2096_s11] ss:$0 sm:$0xff] }
 0x4b3   :  { %1657 = vrot.lane.b32.xlu0 %v1656_v21, %s1726_s23  ;;  %v1605_v23 = vpop.f32.mrb[39].mxu1  ;;  %v1674_v21 = vld [vmem:[%s2095_s12 + $0x18] sm:$0xff]  }
 0x515   :  { %v1648_v24 = vpop.permute.xlu1 %1647 }
 0x516   :  { %v1650_v26 = vunpack.i.h.bf16 %v1648_v24  ;;  %v1649_v29 = vunpack.i.l.bf16 %v1648_v24 }
 0x518   :  { %v1104_v33 = vsel %vm214_vm2, %v762_v2, %v1650_v26  ;;  %v658_v34 = vsel %vm214_vm2, %v315_v50, %v1649_v29 }
 0x51d   :  { %v1653_v25 = vpop.permute.xlu1 %1652 }
 0x51e   :  { %v1655_v30 = vunpack.i.h.bf16 %v1653_v25  ;;  %v1654_v31 = vunpack.i.l.bf16 %v1653_v25 }
 0x520   :  { %v1105_v37 = vsel %vm261_vm3, %v1104_v33, %v1655_v30  ;;  %v659_v38 = vsel %vm261_vm3, %v658_v34, %v1654_v31 }
 0x525   :  { %v1658_v32 = vpop.permute.xlu0 %1657 }
 0x526   :  { %v1660_v35 = vunpack.i.h.bf16 %v1658_v32  ;;  %v1659_v36 = vunpack.i.l.bf16 %v1658_v32 }
 0x528   :  { %v1106_v39 = vsel %vm660_vm4, %v1105_v37, %v1660_v35  ;;  %v661_v40 = vsel %vm660_vm4, %v659_v38, %v1659_v36 }
 0x529   :  { %v1107_v41 = vpack.c.bf16 %v1106_v39, %v661_v40 }
 0x52b   :  { %1611 = vmatmul.mubr.msk.bf16.vlgmr.msra.gmra.mrb[32].mxu0 %vm78_vm1, %v1107_v41 }
 0x52c   :  { %1630 = vmatprep.mubr.msk.bf16.mxu0 %vm1716_vm0, %v1715_v0  ;;  %1623 = vmatpush3.bf16.msra.mxu0 %v1671_v18 }
 0x52d   :  { %1624 = vmatprep.subr.bf16.mxu0 %v1715_v0 }
 0x530   :  { %1625 = vmatpush3.bf16.msra.mxu0 %v1672_v19 }
 0x531   :  { %1626 = vmatprep.subr.bf16.mxu0 %v1715_v0 }
 0x534   :  { %1627 = vmatpush3.bf16.msra.mxu0 %v1673_v20 }
 0x535   :  { %1628 = vmatprep.subr.bf16.mxu0 %v1715_v0 }
 0x538   :  { %1629 = vmatpush3.bf16.msra.mxu0 %v1674_v21 }
 0x5fe   :  { %v1168_v43 = vpop.f32.mrb[32].mxu0 }
 0x5ff   :  { %v1169_v44 = vadd.f32 %v1428_v42, %v1168_v43  ;;  %v1612_v45 = vpop.f32.mrb[33].mxu0 }
 0x600   :  { %v1171_v46 = vpop.f32.mrb[34].mxu0 }
 0x601   :  { %v2026_v47 = vadd.f32 %v1169_v44, %v1817_v3  ;;  %v1172_v48 = vadd.f32 %v1428_v42, %v1171_v46  ;;  %v1613_v49 = vpop.f32.mrb[35].mxu0 }
 0x602   :  { %v1438_v49 = vld [vmem:[%s2097_s13] ss:$0 sm:$0xff] }
 0x603   :  { %v2029_v50 = vadd.f32 %v1172_v48, %v1822_v4  ;;  %v1177_v51 = vsel %vm78_vm1, %v2026_v47, 0.0 }
 0x604   :  { %1178 = vadd.xlane.f32.xlu1 %v1177_v51 }
 0x605   :  { %v1180_v52 = vsel %vm78_vm1, %v2029_v50, 0.0 }
 0x606   :  { %1181 = vadd.xlane.f32.xlu0 %v1180_v52 }
 0x691   :  { %v1179_v53 = vpop.xlane.xlu1 %1178 }
 0x692   :  { %v1184_v54 = vmul.f32 0.03125, %v1179_v53 }
 0x693   :  { %v1182_v55 = vpop.xlane.xlu0 %1181 }
 0x694   :  { %v1186_v56 = vsub.f32 %v2026_v47, %v1184_v54  ;;  %v1185_v3 = vmul.f32 0.03125, %v1182_v55 }
 0x696   :  { %v1187_v57 = vsub.f32 %v2029_v50, %v1185_v3  ;;  %v1188_v58 = vmul.f32 %v1186_v56, %v1186_v56 }
 0x698   :  { %v1190_v4 = vsel %vm78_vm1, %v1188_v58, 0.0  ;;  %v1189_v28 = vmul.f32 %v1187_v57, %v1187_v57 }
 0x699   :  { %1191 = vadd.xlane.f32.xlu0 %v1190_v4 }
 0x69a   :  { %v1193_v59 = vsel %vm78_vm1, %v1189_v28, 0.0 }
 0x69b   :  { %1194 = vadd.xlane.f32.xlu1 %v1193_v59 }
 0x726   :  { %v1192_v62 = vpop.xlane.xlu0 %1191 }
 0x727   :  { %v1196_v63 = vmul.f32 0.03125, %v1192_v62 }
 0x728   :  { %v1195_v1 = vpop.xlane.xlu1 %1194 }
 0x729   :  { %v1198_v2 = vadd.f32 1e-05, %v1196_v63  ;;  %v1197_v5 = vmul.f32 0.03125, %v1195_v1 }
 0x72b   :  { %1707 = vrsqrt.f32 %v1198_v2  ;;  %v1199_v6 = vadd.f32 1e-05, %v1197_v5 }
 0x72d   :  { %1709 = vrsqrt.f32 %v1199_v6 }
 0x735   :  { %v1708_v7 = vpop.eup %1707 }
 0x736   :  { %v1202_v9 = vmul.f32 %v1708_v7, %v1186_v56 }
 0x737   :  { %v1710_v10 = vpop.eup %1709 }
 0x738   :  { %v1211_v11 = vmul.f32 %v1432_v8, %v1202_v9  ;;  %v1203_v12 = vmul.f32 %v1710_v10, %v1187_v57 }
 0x73a   :  { %v1212_v14 = vmul.f32 %v1432_v8, %v1203_v12  ;;  %v1220_v15 = vadd.f32 %v1433_v13, %v1211_v11 }
 0x73c   :  { %v1221_v16 = vadd.f32 %v1433_v13, %v1212_v14 }
 0x73e   :  { %v1222_v17 = vpack.c.bf16 %v1221_v16, %v1220_v15 }
 0x740   :  { %1619 = vmatmul.mubr.msk.bf16.vlgmr.msra.gmra.mrb[40].mxu1 %vm78_vm1, %v1222_v17 }
 0x813   :  { %v1283_v22 = vpop.f32.mrb[40].mxu1 }
 0x814   :  { %v1284_v23 = vadd.f32 %v1434_v27, %v1283_v22  ;;  %v1620_v24 = vpop.f32.mrb[41].mxu1 }
 0x815   :  { %v1286_v25 = vpop.f32.mrb[42].mxu1 }
 0x816   :  { %v1292_v26 = vmul.f32 %v1284_v23, %v1284_v23  ;;  %v1287_v29 = vadd.f32 %v1434_v27, %v1286_v25  ;;  %v1621_v30 = vpop.f32.mrb[43].mxu1  ;;  %v1290_v42 = vmul.f32 0.5, %v1284_v23 }
 0x818   :  { %v1294_v31 = vmul.f32 %v1292_v26, %v1284_v23  ;;  %v1293_v32 = vmul.f32 %v1287_v29, %v1287_v29  ;;  %v1291_v43 = vmul.f32 0.5, %v1287_v29 }
 0x81a   :  { %v1296_v33 = vmul.f32 0.044715, %v1294_v31  ;;  %v1295_v0 = vmul.f32 %v1293_v32, %v1287_v29 }
 0x81c   :  { %v1298_v34 = vadd.f32 %v1296_v33, %v1284_v23  ;;  %v1297_v35 = vmul.f32 0.044715, %v1295_v0 }
 0x81e   :  { %v1300_v36 = vmul.f32 0.7978846, %v1298_v34  ;;  %v1299_v37 = vadd.f32 %v1297_v35, %v1287_v29 }
 0x820   :  { %1711 = vtanh.f32 %v1300_v36  ;;  %v1301_v38 = vmul.f32 0.7978846, %v1299_v37 }
 0x822   :  { %1713 = vtanh.f32 %v1301_v38 }
 0x82a   :  { %v1712_v39 = vpop.eup %1711 }
 0x82b   :  { %v1304_v40 = vadd.f32 1.0, %v1712_v39 }
 0x82c   :  { %v1714_v41 = vpop.eup %1713 }
 0x82d   :  { %v1305_v44 = vadd.f32 1.0, %v1714_v41  ;;  %v1306_v45 = vmul.f32 %v1304_v40, %v1290_v42 }
 0x82f   :  { %v1307_v46 = vmul.f32 %v1305_v44, %v1291_v43 }
 0x831   :  { %v1308_v48 = vpack.c.bf16 %v1307_v46, %v1306_v45 }
 0x833   :  { %1631 = vmatmul.mubr.msk.bf16.vlgmr.msra.gmra.mrb[36].mxu0 %vm1348_vm5, %v1308_v48 }
 0x906   :  { %v1386_v51 = vpop.f32.mrb[36].mxu0 }
 0x907   :  { %v1387_v52 = vadd.f32 %v1438_v49, %v1386_v51  ;;  %v1632_v53 = vpop.f32.mrb[37].mxu0 }
 0x908   :  { %v1389_v54 = vpop.f32.mrb[38].mxu0 }
 0x909   :  { %v1393_v55 = vadd.f32 %v1387_v52, %v2026_v47  ;;  %v1390_v56 = vadd.f32 %v1438_v49, %v1389_v54  ;;  %v1633_v3 = vpop.f32.mrb[39].mxu0 }
 0x90b   :  { %1395 = vst.msk [vmem:[%s2098_s14] sm:$0xff] %vm78_vm1, %v1393_v55  ;;  %v1394_v57 = vadd.f32 %v1390_v56, %v2029_v50 }
 0x90d   :  { %1396 = vst.msk [vmem:[%s2098_s14 + $0x8] sm:$0xff] %vm78_vm1, %v1394_v57 }

</bundles_post_ra>
